<compile_context>
chip_gen: v7x
topology: tpu7x:2x2x1
jax: 0.10.0
libtpu: 0.0.40
codegen_flags: <defaults>
</compile_context>

<pallas_src>
import functools

import jax
import jax.numpy as jnp
from jax.experimental import pallas as pl
from jax.experimental.pallas import tpu as pltpu


def _round_up(x, m):
    return ((x + m - 1) // m) * m


def _bf16_elementwise_ok():
    """bf16 VPU elementwise on v6e/v7x; f32 elementwise on v5-class chips."""
    try:
        kind = jax.devices()[0].device_kind.lower()
    except Exception:
        return True
    return "v5" not in kind


def _choose_block_b(b):
    """Batch tile: large (512) for big batches, clamped for small ones, split
    so the 'parallel' axis has >=2 steps whenever there is >=256 rows of work
    (keeps both v7x TensorCores busy; near-neutral on single-TC chips)."""
    b128 = _round_up(max(b, 1), 128)
    bb = min(512, b128)
    if b128 >= 256 and _round_up(b, bb) // bb < 2:
        bb = _round_up((b + 1) // 2, 8)   # 8-aligned half tile -> 2 grid steps
    return bb


def _fcnet_kernel(n_hidden, bf16_elem, *refs):
    """One batch tile.

    refs (n_hidden > 0):  x, w0, wh, wf, class_bias, out
    refs (n_hidden == 0): x, w0,     wf, class_bias, out

    x    : (TB, 784)     f32   cast to bf16 in-kernel
    w0   : (784, LP)     bf16
    wh   : (NH, LP, LP)  bf16  stacked hidden layers
    wf   : (LP, OP)      bf16
    bias : (1, OP)       f32   0 for real classes, -1e30 for padded lanes
    out  : (TB, OP)      f32   lane-dense log-prob slab
    """
    if n_hidden > 0:
        x_ref, w0_ref, wh_ref, wf_ref, bias_ref, o_ref = refs
    else:
        x_ref, w0_ref, wf_ref, bias_ref, o_ref = refs
        wh_ref = None

    def relu_to_bf16(acc_f32):
        # Identical numerics either way; bf16 path halves vreg/VPU traffic on
        # bf16-native chips (v6e/v7x).
        if bf16_elem:
            return jnp.maximum(acc_f32.astype(jnp.bfloat16), 0)
        return jnp.maximum(acc_f32, 0.0).astype(jnp.bfloat16)

    # Layer 0: 784 -> LP.  bf16 MXU operands, f32 accumulation.
    h = relu_to_bf16(
        jnp.dot(x_ref[...].astype(jnp.bfloat16), w0_ref[...],
                preferred_element_type=jnp.float32))

    # Hidden stack LP -> LP (static unroll; n_hidden is small).
    for k in range(n_hidden):
        h = relu_to_bf16(
            jnp.dot(h, wh_ref[k], preferred_element_type=jnp.float32))

    # Final projection (no ReLU) + additive mask of padded class lanes.
    logits = jnp.dot(h, wf_ref[...], preferred_element_type=jnp.float32)
    logits = logits + bias_ref[...]

    # Numerically stable log_softmax over classes, f32 throughout.
    m = jnp.max(logits, axis=-1, keepdims=True)
    shifted = logits - m
    lse = jnp.log(jnp.sum(jnp.exp(shifted), axis=-1, keepdims=True))
    o_ref[...] = shifted - lse


def fcnet_mnist_forward(x, layer_weights, final_weight, *, block_b=None):
    """x: (B, 784) f32. layer_weights[i]: (in_i, out_i). final_weight: (latent, out_dim)."""
    b, in_dim = x.shape
    assert in_dim == 784
    latent = layer_weights[0].shape[1]
    out_dim = final_weight.shape[1]
    n_hidden = len(layer_weights) - 1

    lp = max(128, _round_up(latent, 128))      # padded latent (lane/MXU-dense)
    op = max(128, _round_up(out_dim, 128))     # padded class dim (lane-dense store)

    if block_b is None:
        block_b = _choose_block_b(b)
    b_pad = _round_up(b, block_b)

    # Activations: no bf16 wrapper copy.  At most one fused row-pad when the
    # batch is not a tile multiple; the bf16 cast happens inside the kernel.
    x = x.astype(jnp.float32)
    x_p = x if b_pad == b else jnp.pad(x, ((0, b_pad - b), (0, 0)))

    # Weights: one-time zero-pad + bf16 cast (fused pads; VMEM-resident).
    w0 = jnp.pad(layer_weights[0].astype(jnp.bfloat16),
                 ((0, 0), (0, lp - latent)))
    wf = jnp.pad(final_weight.astype(jnp.bfloat16),
                 ((0, lp - latent), (0, op - out_dim)))
    if n_hidden > 0:
        wh = jnp.pad(
            jnp.stack([w.astype(jnp.bfloat16) for w in layer_weights[1:]]),
            ((0, 0), (0, lp - latent), (0, lp - latent)))
    # Additive class mask row: 0 for real classes, -1e30 for padded lanes
    # (applied before max/logsumexp; exp underflows cleanly to 0).
    class_bias = jnp.where(jnp.arange(op)[None, :] < out_dim,
                           0.0, -1e30).astype(jnp.float32)

    grid = (b_pad // block_b,)

    in_specs = [
        pl.BlockSpec((block_b, 784), lambda i: (i, 0)),   # activations: batch-tiled
        pl.BlockSpec((784, lp), lambda i: (0, 0)),        # weights: resident
    ]
    args = [x_p, w0]
    if n_hidden > 0:
        in_specs.append(pl.BlockSpec((n_hidden, lp, lp), lambda i: (0, 0, 0)))
        args.append(wh)
    in_specs += [
        pl.BlockSpec((lp, op), lambda i: (0, 0)),
        pl.BlockSpec((1, op), lambda i: (0, 0)),
    ]
    args += [wf, class_bias]

    # VMEM budget derived from real tile sizes: 2x for the pipelined x/out
    # tiles, 2x on weights to cover default double buffering, plus margin.
    weight_bytes = ((w0.size + (wh.size if n_hidden > 0 else 0) + wf.size) * 2
                    + class_bias.size * 4)
    need = 2 * (block_b * 784 * 4) + 2 * (block_b * op * 4) + 2 * weight_bytes
    vmem_limit = int(min(int(1.25 * need) + (8 << 20), 56 << 20))

    flops = 2 * b_pad * (784 * lp + n_hidden * lp * lp + lp * op)
    transcendentals = b_pad * (op + 1)                   # exp per class + log per row
    bytes_accessed = x_p.size * 4 + weight_bytes + b_pad * op * 4

    out_pad = pl.pallas_call(
        functools.partial(_fcnet_kernel, n_hidden, _bf16_elementwise_ok()),
        out_shape=jax.ShapeDtypeStruct((b_pad, op), jnp.float32),
        grid=grid,
        in_specs=in_specs,
        out_specs=pl.BlockSpec((block_b, op), lambda i: (i, 0)),
        compiler_params=pltpu.CompilerParams(
            dimension_semantics=("parallel",),           # megacore / 2x TC on v7x
            vmem_limit_bytes=vmem_limit,
        ),
        cost_estimate=pl.CostEstimate(
            flops=flops,
            transcendentals=transcendentals,
            bytes_accessed=bytes_accessed,
        ),
    )(*args)

    # Drop batch padding and padded class lanes.
    return out_pad[:b, :out_dim]


def make_params(key, latent_dim, n_hidden_layers, output_dim):
    """Deterministic synthetic weights, PyTorch Linear shapes (out, in), then transposed."""
    dims = [(784, latent_dim)] + [(latent_dim, latent_dim)] * n_hidden_layers
    keys = jax.random.split(key, len(dims) + 1)
    layer_weights = []
    for k, (fan_in, fan_out) in zip(keys[:-1], dims):
        bound = 1.0 / jnp.sqrt(fan_in)
        w = jax.random.uniform(k, (fan_out, fan_in), jnp.float32, -bound, bound)
        layer_weights.append(w.T)  # (in, out) so every layer is h @ W
    bound = 1.0 / jnp.sqrt(latent_dim)
    wf = jax.random.uniform(keys[-1], (output_dim, latent_dim), jnp.float32, -bound, bound)
    return layer_weights, wf.T


def reference_forward(x, layer_weights, final_weight):
    """Pure-JAX reference mirroring the kernel's bf16-operand / f32-accumulate math."""
    h = x.astype(jnp.bfloat16)
    for w in layer_weights:
        a = jnp.dot(h, w.astype(jnp.bfloat16), preferred_element_type=jnp.float32)
        h = jnp.maximum(a, 0.0).astype(jnp.bfloat16)
    logits = jnp.dot(h, final_weight.astype(jnp.bfloat16),
                     preferred_element_type=jnp.float32)
    return jax.nn.log_softmax(logits, axis=-1)


if __name__ == "__main__":
    # Small, MNIST-consistent shapes.
    batch = 8
    latent_dim = 32
    n_hidden_layers = 2
    output_dim = 10

    key = jax.random.PRNGKey(0)
    k_x, k_w = jax.random.split(key)

    # MNIST-like NCHW input (B, 1, 28, 28) -> view(-1, 784)
    x_img = jax.random.normal(k_x, (batch, 1, 28, 28), jnp.float32)
    x = x_img.reshape(-1, 784)

    layer_weights, final_weight = make_params(k_w, latent_dim, n_hidden_layers, output_dim)

    out = fcnet_mnist_forward(x, layer_weights, final_weight)
    out = jax.block_until_ready(out)

    ref = reference_forward(x, layer_weights, final_weight)
    assert out.shape == (batch, output_dim)
    assert jnp.allclose(out, ref.astype(jnp.float32), atol=2e-3, rtol=2e-3), (
        "max abs diff %e" % float(jnp.max(jnp.abs(out - ref.astype(jnp.float32)))))

    print("KERNEL_OK")
</pallas_src>

<mosaic_0001>
module attributes {stable_mosaic.version = 11 : i64} {
  func.func @_fcnet_kernel(%arg0: i32, %arg1: memref<128x784xf32, #tpu.memory_space<vmem>>, %arg2: memref<784x128xbf16, #tpu.memory_space<vmem>>, %arg3: memref<2x128x128xbf16, #tpu.memory_space<vmem>>, %arg4: memref<128x128xbf16, #tpu.memory_space<vmem>>, %arg5: memref<1x128xf32, #tpu.memory_space<vmem>>, %arg6: memref<128x128xf32, #tpu.memory_space<vmem>>) attributes {dimension_semantics = [#tpu.dimension_semantics<parallel>], iteration_bounds = array<i64: 1>, scalar_prefetch = 0 : i64, scratch_operands = 0 : i64, tpu.core_type = #tpu.core_type<tc>, window_params = [{transform_indices = @transform_0, window_bounds = array<i64: 128, 784>}, {pipeline_mode = #tpu.pipeline_mode<synchronous>, transform_indices = @transform_1, window_bounds = array<i64: 784, 128>}, {pipeline_mode = #tpu.pipeline_mode<synchronous>, transform_indices = @transform_2, window_bounds = array<i64: 2, 128, 128>}, {pipeline_mode = #tpu.pipeline_mode<synchronous>, transform_indices = @transform_3, window_bounds = array<i64: 128, 128>}, {pipeline_mode = #tpu.pipeline_mode<synchronous>, transform_indices = @transform_4, window_bounds = array<i64: 1, 128>}, {transform_indices = @transform_5, window_bounds = array<i64: 128, 128>}]} {
    %c0 = arith.constant 0 : index
    %c0_0 = arith.constant 0 : index
    %0 = vector.load %arg1[%c0, %c0_0] : memref<128x784xf32, #tpu.memory_space<vmem>>, vector<128x784xf32>
    %1 = arith.truncf %0 : vector<128x784xf32> to vector<128x784xbf16>
    %c0_1 = arith.constant 0 : index
    %c0_2 = arith.constant 0 : index
    %2 = vector.load %arg2[%c0_1, %c0_2] : memref<784x128xbf16, #tpu.memory_space<vmem>>, vector<784x128xbf16>
    %cst = arith.constant dense<0.000000e+00> : vector<128x128xf32>
    %3 = tpu.matmul %1, %2, %cst {dimension_numbers = #tpu.dot_dimension_numbers<[1], [0], [0], [1], [0, 0, 1, 1], [], []>} : vector<128x784xbf16>, vector<784x128xbf16>, vector<128x128xf32> -> vector<128x128xf32>
    %4 = arith.truncf %3 : vector<128x128xf32> to vector<128x128xbf16>
    %cst_3 = arith.constant 0.000000e+00 : bf16
    %5 = vector.broadcast %cst_3 : bf16 to vector<128x128xbf16>
    %6 = arith.maximumf %4, %5 : vector<128x128xbf16>
    %c0_4 = arith.constant 0 : index
    %c0_5 = arith.constant 0 : index
    %c0_6 = arith.constant 0 : index
    %7 = vector.load %arg3[%c0_4, %c0_5, %c0_6] : memref<2x128x128xbf16, #tpu.memory_space<vmem>>, vector<1x128x128xbf16>
    %8 = vector.shape_cast %7 : vector<1x128x128xbf16> to vector<128x128xbf16>
    %cst_7 = arith.constant dense<0.000000e+00> : vector<128x128xf32>
    %9 = tpu.matmul %6, %8, %cst_7 {dimension_numbers = #tpu.dot_dimension_numbers<[1], [0], [0], [1], [0, 0, 1, 1], [], []>} : vector<128x128xbf16>, vector<128x128xbf16>, vector<128x128xf32> -> vector<128x128xf32>
    %10 = arith.truncf %9 : vector<128x128xf32> to vector<128x128xbf16>
    %cst_8 = arith.constant 0.000000e+00 : bf16
    %11 = vector.broadcast %cst_8 : bf16 to vector<128x128xbf16>
    %12 = arith.maximumf %10, %11 : vector<128x128xbf16>
    %c1 = arith.constant 1 : index
    %c0_9 = arith.constant 0 : index
    %c0_10 = arith.constant 0 : index
    %13 = vector.load %arg3[%c1, %c0_9, %c0_10] : memref<2x128x128xbf16, #tpu.memory_space<vmem>>, vector<1x128x128xbf16>
    %14 = vector.shape_cast %13 : vector<1x128x128xbf16> to vector<128x128xbf16>
    %cst_11 = arith.constant dense<0.000000e+00> : vector<128x128xf32>
    %15 = tpu.matmul %12, %14, %cst_11 {dimension_numbers = #tpu.dot_dimension_numbers<[1], [0], [0], [1], [0, 0, 1, 1], [], []>} : vector<128x128xbf16>, vector<128x128xbf16>, vector<128x128xf32> -> vector<128x128xf32>
    %16 = arith.truncf %15 : vector<128x128xf32> to vector<128x128xbf16>
    %cst_12 = arith.constant 0.000000e+00 : bf16
    %17 = vector.broadcast %cst_12 : bf16 to vector<128x128xbf16>
    %18 = arith.maximumf %16, %17 : vector<128x128xbf16>
    %c0_13 = arith.constant 0 : index
    %c0_14 = arith.constant 0 : index
    %19 = vector.load %arg4[%c0_13, %c0_14] : memref<128x128xbf16, #tpu.memory_space<vmem>>, vector<128x128xbf16>
    %cst_15 = arith.constant dense<0.000000e+00> : vector<128x128xf32>
    %20 = tpu.matmul %18, %19, %cst_15 {dimension_numbers = #tpu.dot_dimension_numbers<[1], [0], [0], [1], [0, 0, 1, 1], [], []>} : vector<128x128xbf16>, vector<128x128xbf16>, vector<128x128xf32> -> vector<128x128xf32>
    %c0_16 = arith.constant 0 : index
    %c0_17 = arith.constant 0 : index
    %21 = vector.load %arg5[%c0_16, %c0_17] : memref<1x128xf32, #tpu.memory_space<vmem>>, vector<1x128xf32>
    %22 = vector.broadcast %21 : vector<1x128xf32> to vector<128x128xf32>
    %23 = arith.addf %20, %22 : vector<128x128xf32>
    %cst_18 = arith.constant dense<0xFF800000> : vector<128xf32>
    %24 = vector.multi_reduction <maximumf>, %23, %cst_18 [1] : vector<128x128xf32> to vector<128xf32>
    %25 = vector.shape_cast %24 : vector<128xf32> to vector<128x1xf32>
    %26 = vector.broadcast %25 : vector<128x1xf32> to vector<128x128xf32>
    %27 = arith.subf %23, %26 : vector<128x128xf32>
    %28 = math.exp %27 : vector<128x128xf32>
    %cst_19 = arith.constant dense<0.000000e+00> : vector<128xf32>
    %29 = vector.multi_reduction <add>, %28, %cst_19 [1] : vector<128x128xf32> to vector<128xf32>
    %30 = vector.shape_cast %29 : vector<128xf32> to vector<128x1xf32>
    %31 = math.log %30 : vector<128x1xf32>
    %32 = vector.broadcast %31 : vector<128x1xf32> to vector<128x128xf32>
    %33 = arith.subf %27, %32 : vector<128x128xf32>
    %c0_20 = arith.constant 0 : index
    %c0_21 = arith.constant 0 : index
    %34 = vector.load %arg6[%c0_20, %c0_21] : memref<128x128xf32, #tpu.memory_space<vmem>>, vector<128x128xf32>
    tpu.vector_store %arg6[%c0_20, %c0_21], %33 {strides = array<i32>} : memref<128x128xf32, #tpu.memory_space<vmem>>, vector<128x128xf32>,
    return
  }
  func.func @transform_0(%arg0: i32) -> (i32, i32) {
    %c0_i32 = arith.constant 0 : i32
    %c0_i32_0 = arith.constant 0 : i32
    return %arg0, %c0_i32 : i32, i32
  }
  func.func @transform_1(%arg0: i32) -> (i32, i32) {
    %c0_i32 = arith.constant 0 : i32
    %c0_i32_0 = arith.constant 0 : i32
    %c0_i32_1 = arith.constant 0 : i32
    return %c0_i32, %c0_i32_0 : i32, i32
  }
  func.func @transform_2(%arg0: i32) -> (i32, i32, i32) {
    %c0_i32 = arith.constant 0 : i32
    %c0_i32_0 = arith.constant 0 : i32
    %c0_i32_1 = arith.constant 0 : i32
    %c0_i32_2 = arith.constant 0 : i32
    return %c0_i32, %c0_i32_0, %c0_i32_1 : i32, i32, i32
  }
  func.func @transform_3(%arg0: i32) -> (i32, i32) {
    %c0_i32 = arith.constant 0 : i32
    %c0_i32_0 = arith.constant 0 : i32
    %c0_i32_1 = arith.constant 0 : i32
    return %c0_i32, %c0_i32_0 : i32, i32
  }
  func.func @transform_4(%arg0: i32) -> (i32, i32) {
    %c0_i32 = arith.constant 0 : i32
    %c0_i32_0 = arith.constant 0 : i32
    %c0_i32_1 = arith.constant 0 : i32
    return %c0_i32, %c0_i32_0 : i32, i32
  }
  func.func @transform_5(%arg0: i32) -> (i32, i32) {
    %c0_i32 = arith.constant 0 : i32
    %c0_i32_0 = arith.constant 0 : i32
    return %arg0, %c0_i32 : i32, i32
  }
}

</mosaic_0001>

<bundles_post_ra>
// kernel: tpu_custom_call.1
= control target key start
LH: loop header
LB: loop body
LE: loop exit
PB: predicated region body
PF: predicated region fallthrough
CT: control target
= control target key end

     0   :  { %vm582_vm0 = vcmask 130048   ;;  %s3135_s0 = inlined_call_operand.vmem [shape: f32[128,784], index: 0, kind: input, shape index: {}]   ;;  %s3136_s1 = inlined_call_operand.vmem [shape: bf16[784,128], index: 1, kind: input, shape index: {}]   ;;  %s3137_s2 = inlined_call_operand.vmem [shape: bf16[2,128,128], index: 2, kind: input, shape index: {}]   ;;  %s3138_s3 = inlined_call_operand.vmem [shape: bf16[128,128], index: 3, kind: input, shape index: {}]   ;;  %s3139_s4 = inlined_call_operand.vmem [shape: f32[1,128], index: 4, kind: input, shape index: {}]   ;;  %s3140_s5 = inlined_call_operand.hbm [shape: f32[128,128], index: 5, kind: output, shape index: {}]  }
   0x1   :  { %v2191_v0 = vld [vmem:[%s3136_s1 + $0x40] sm:$0xff]   ;;  %v2195_v4 = vld [vmem:[%s3136_s1 + $0x48] sm:$0xff]   ;;  %v2199_v8 = vld [vmem:[%s3136_s1 + $0x50] sm:$0xff]  }
   0x2   :  { %v2192_v1 = vld [vmem:[%s3136_s1 + $0xc0] sm:$0xff]   ;;  %1824 = vmatprep.subr.bf16.mxu0 %v2191_v0  ;;  %v2196_v5 = vld [vmem:[%s3136_s1 + $0xc8] sm:$0xff]   ;;  %v2200_v9 = vld [vmem:[%s3136_s1 + $0xd0] sm:$0xff]  }
   0x3   :  { %v2193_v2 = vld [vmem:[%s3136_s1] sm:$0xff]   ;;  %1888 = vmatprep.subr.bf16.mxu1 %v2192_v1  ;;  %v2197_v6 = vld [vmem:[%s3136_s1 + $0x8] sm:$0xff]   ;;  %v2201_v10 = vld [vmem:[%s3136_s1 + $0x10] sm:$0xff]  }
   0x4   :  { %v2194_v3 = vld [vmem:[%s3136_s1 + $0x80] sm:$0xff]   ;;  %1825 = vmatpush3.bf16.msra.mxu0 %v2193_v2  ;;  %v2198_v7 = vld [vmem:[%s3136_s1 + $0x88] sm:$0xff]   ;;  %v2202_v11 = vld [vmem:[%s3136_s1 + $0x90] sm:$0xff]  }
   0x5   :  { %1889 = vmatpush3.bf16.msra.mxu1 %v2194_v3  ;;  %1826 = vmatprep.subr.bf16.mxu0 %v2195_v4  ;;  %v2203_v12 = vld [vmem:[%s3136_s1 + $0x58] sm:$0xff]   ;;  %v2207_v16 = vld [vmem:[%s3136_s1 + $0x60] sm:$0xff]   ;;  %v2211_v20 = vld [vmem:[%s3136_s1 + $0x68] sm:$0xff]  }
   0x6   :  { %1890 = vmatprep.subr.bf16.mxu1 %v2196_v5  ;;  %v2204_v13 = vld [vmem:[%s3136_s1 + $0xd8] sm:$0xff]   ;;  %v2208_v17 = vld [vmem:[%s3136_s1 + $0xe0] sm:$0xff]   ;;  %v2212_v21 = vld [vmem:[%s3136_s1 + $0xe8] sm:$0xff]  }
   0x7   :  { %v2205_v14 = vld [vmem:[%s3136_s1 + $0x18] sm:$0xff]   ;;  %v2209_v18 = vld [vmem:[%s3136_s1 + $0x20] sm:$0xff]   ;;  %v2213_v22 = vld [vmem:[%s3136_s1 + $0x28] sm:$0xff]  }
   0x8   :  { %1827 = vmatpush3.bf16.msra.mxu0 %v2197_v6  ;;  %v2206_v15 = vld [vmem:[%s3136_s1 + $0x98] sm:$0xff]   ;;  %v2210_v19 = vld [vmem:[%s3136_s1 + $0xa0] sm:$0xff]   ;;  %v2214_v23 = vld [vmem:[%s3136_s1 + $0xa8] sm:$0xff]  }
   0x9   :  { %1891 = vmatpush3.bf16.msra.mxu1 %v2198_v7  ;;  %1828 = vmatprep.subr.bf16.mxu0 %v2199_v8  ;;  %v2215_v24 = vld [vmem:[%s3136_s1 + $0x70] sm:$0xff]   ;;  %v2219_v28 = vld [vmem:[%s3136_s1 + $0x78] sm:$0xff]   ;;  %v23_v32 = vld [vmem:[%s3135_s0 + $0x8] sm:$0xff] }
   0xa   :  { %1892 = vmatprep.subr.bf16.mxu1 %v2200_v9  ;;  %v2216_v25 = vld [vmem:[%s3136_s1 + $0xf0] sm:$0xff]   ;;  %v2220_v29 = vld [vmem:[%s3136_s1 + $0xf8] sm:$0xff]   ;;  %v30_v33 = vld [vmem:[%s3135_s0 + $0x40] sm:$0xff] }
   0xb   :  { %v2217_v26 = vld [vmem:[%s3136_s1 + $0x30] sm:$0xff]   ;;  %v2221_v30 = vld [vmem:[%s3136_s1 + $0x38] sm:$0xff]   ;;  %v135_v35 = vpack.c.bf16 %v30_v33, %v23_v32  ;;  %v22_v37 = vld [vmem:[%s3135_s0] sm:$0xff] }
   0xc   :  { %1829 = vmatpush3.bf16.msra.mxu0 %v2201_v10  ;;  %v2218_v27 = vld [vmem:[%s3136_s1 + $0xb0] sm:$0xff]   ;;  %v2222_v31 = vld [vmem:[%s3136_s1 + $0xb8] sm:$0xff]   ;;  %v31_v42 = vld [vmem:[%s3135_s0 + $0x48] sm:$0xff] }
   0xd   :  { %1893 = vmatpush3.bf16.msra.mxu1 %v2202_v11  ;;  %1830 = vmatprep.subr.bf16.mxu0 %v2203_v12  ;;  %v25_v34 = vld [vmem:[%s3135_s0 + $0x18] sm:$0xff]  ;;  %v32_v36 = vld [vmem:[%s3135_s0 + $0x50] sm:$0xff]  ;;  %v2223_v44 = vld [vmem:[%s3136_s1 + $0x140] sm:$0xff]  }
   0xe   :  { %1894 = vmatprep.subr.bf16.mxu1 %v2204_v13  ;;  %v29_v38 = vld [vmem:[%s3135_s0 + $0x38] sm:$0xff]  ;;  %v137_v39 = vpack.c.bf16 %v32_v36, %v25_v34  ;;  %v24_v41 = vld [vmem:[%s3135_s0 + $0x10] sm:$0xff]  ;;  %639 = vmatprep.mubr.bf16.mxu0 %v135_v35  ;;  %v2224_v45 = vld [vmem:[%s3136_s1 + $0x100] sm:$0xff]  }
   0xf   :  { %v134_v40 = vpack.c.bf16 %v29_v38, %v22_v37  ;;  %v136_v43 = vpack.c.bf16 %v31_v42, %v24_v41  ;;  %v37_v46 = vld [vmem:[%s3135_s0 + $0x78] sm:$0xff]  ;;  %v44_v47 = vld [vmem:[%s3135_s0 + $0xb0] sm:$0xff]  ;;  %v39_v48 = vld [vmem:[%s3135_s0 + $0x88] sm:$0xff] }
  0x10   :  { %1831 = vmatpush3.bf16.msra.mxu0 %v2205_v14  ;;  %736 = vmatprep.mubr.bf16.mxu1 %v137_v39  ;;  %v46_v49 = vld [vmem:[%s3135_s0 + $0xc0] sm:$0xff]  ;;  %v142_v50 = vpack.c.bf16 %v44_v47, %v37_v46  ;;  %v36_v52 = vld [vmem:[%s3135_s0 + $0x70] sm:$0xff]  ;;  %v43_v53 = vld [vmem:[%s3135_s0 + $0xa8] sm:$0xff] }
  0x11   :  { %1895 = vmatpush3.bf16.msra.mxu1 %v2206_v15  ;;  %1832 = vmatprep.subr.bf16.mxu0 %v2207_v16  ;;  %v144_v51 = vpack.c.bf16 %v46_v49, %v39_v48  ;;  %v38_v54 = vld [vmem:[%s3135_s0 + $0x80] sm:$0xff]  ;;  %v45_v55 = vld [vmem:[%s3135_s0 + $0xb8] sm:$0xff]  ;;  %v141_v56 = vpack.c.bf16 %v43_v53, %v36_v52  ;;  %v2225_v57 = vld [vmem:[%s3136_s1 + $0x148] sm:$0xff]  }
  0x12   :  { %1896 = vmatprep.subr.bf16.mxu1 %v2208_v17  ;;  %v143_v58 = vpack.c.bf16 %v45_v55, %v38_v54  ;;  %v2226_v59 = vld [vmem:[%s3136_s1 + $0x108] sm:$0xff]   ;;  %v58_v61 = vld [vmem:[%s3135_s0 + $0x120] sm:$0xff]  ;;  %v53_v63 = vld [vmem:[%s3135_s0 + $0xf8] sm:$0xff] }
  0x13   :  { %v51_v60 = vld [vmem:[%s3135_s0 + $0xe8] sm:$0xff]  ;;  %v60_v0 = vld [vmem:[%s3135_s0 + $0x130] sm:$0xff]  ;;  %v50_v2 = vld [vmem:[%s3135_s0 + $0xe0] sm:$0xff] }
  0x14   :  { %1833 = vmatpush3.bf16.msra.mxu0 %v2209_v18  ;;  %v149_v62 = vpack.c.bf16 %v58_v61, %v51_v60  ;;  %v151_v1 = vpack.c.bf16 %v60_v0, %v53_v63  ;;  %v57_v3 = vld [vmem:[%s3135_s0 + $0x118] sm:$0xff]  ;;  %v52_v4 = vld [vmem:[%s3135_s0 + $0xf0] sm:$0xff]  ;;  %v59_v7 = vld [vmem:[%s3135_s0 + $0x128] sm:$0xff] }
  0x15   :  { %1897 = vmatpush3.bf16.msra.mxu1 %v2210_v19  ;;  %1834 = vmatprep.subr.bf16.mxu0 %v2211_v20  ;;  %v2227_v5 = vld [vmem:[%s3136_s1 + $0x150] sm:$0xff]   ;;  %v65_v8 = vld [vmem:[%s3135_s0 + $0x158] sm:$0xff]  ;;  %v67_v10 = vld [vmem:[%s3135_s0 + $0x168] sm:$0xff]  ;;  %v148_v12 = vpack.c.bf16 %v57_v3, %v50_v2  ;;  %v150_v13 = vpack.c.bf16 %v59_v7, %v52_v4 }
  0x16   :  { %1898 = vmatprep.subr.bf16.mxu1 %v2212_v21  ;;  %v2228_v6 = vld [vmem:[%s3136_s1 + $0x110] sm:$0xff]   ;;  %v74_v11 = vld [vmem:[%s3135_s0 + $0x1a0] sm:$0xff]  ;;  %v2229_v15 = vld [vmem:[%s3136_s1 + $0x158] sm:$0xff]  }
  0x17   :  { %v72_v9 = vld [vmem:[%s3135_s0 + $0x190] sm:$0xff]  ;;  %v158_v16 = vpack.c.bf16 %v74_v11, %v67_v10  ;;  %v2230_v17 = vld [vmem:[%s3136_s1 + $0x118] sm:$0xff]   ;;  %v71_v19 = vld [vmem:[%s3135_s0 + $0x188] sm:$0xff] }
  0x18   :  { %1835 = vmatpush3.bf16.msra.mxu0 %v2213_v22  ;;  %v156_v14 = vpack.c.bf16 %v72_v9, %v65_v8  ;;  %v64_v18 = vld [vmem:[%s3135_s0 + $0x150] sm:$0xff]  ;;  %v66_v20 = vld [vmem:[%s3135_s0 + $0x160] sm:$0xff]  ;;  %v73_v21 = vld [vmem:[%s3135_s0 + $0x198] sm:$0xff] }
  0x19   :  { %1899 = vmatpush3.bf16.msra.mxu1 %v2214_v23  ;;  %1836 = vmatprep.subr.bf16.mxu0 %v2215_v24  ;;  %v79_v22 = vld [vmem:[%s3135_s0 + $0x1c8] sm:$0xff]  ;;  %v86_v23 = vld [vmem:[%s3135_s0 + $0x200] sm:$0xff]  ;;  %v81_v24 = vld [vmem:[%s3135_s0 + $0x1d8] sm:$0xff] }
  0x1a   :  { %1900 = vmatprep.subr.bf16.mxu1 %v2216_v25  ;;  %v88_v25 = vld [vmem:[%s3135_s0 + $0x210] sm:$0xff]  ;;  %v2234_v33 = vld [vmem:[%s3136_s1 + $0x168] sm:$0xff]   ;;  %v78_v35 = vld [vmem:[%s3135_s0 + $0x1c0] sm:$0xff] }
  0x1b   :  { %v165_v32 = vpack.c.bf16 %v88_v25, %v81_v24  ;;  %v2235_v34 = vld [vmem:[%s3136_s1 + $0x128] sm:$0xff]   ;;  %v85_v36 = vld [vmem:[%s3135_s0 + $0x1f8] sm:$0xff]  ;;  %v80_v37 = vld [vmem:[%s3135_s0 + $0x1d0] sm:$0xff] }
  0x1c   :  { %1837 = vmatpush3.bf16.msra.mxu0 %v2217_v26  ;;  %v2231_v26 = vld [vmem:[%s3136_s1 + $0x160] sm:$0xff]   ;;  %v87_v38 = vld [vmem:[%s3135_s0 + $0x208] sm:$0xff]  ;;  %v93_v39 = vld [vmem:[%s3135_s0 + $0x238] sm:$0xff] }
  0x1d   :  { %1901 = vmatpush3.bf16.msra.mxu1 %v2218_v27  ;;  %1838 = vmatprep.subr.bf16.mxu0 %v2219_v28  ;;  %v2232_v27 = vld [vmem:[%s3136_s1 + $0x120] sm:$0xff]   ;;  %v155_v28 = vpack.c.bf16 %v71_v19, %v64_v18  ;;  %v95_v41 = vld [vmem:[%s3135_s0 + $0x248] sm:$0xff]  ;;  %v2237_v47 = vld [vmem:[%s3136_s1 + $0x130] sm:$0xff]  }
  0x1e   :  { %1902 = vmatprep.subr.bf16.mxu1 %v2220_v29  ;;  %v2233_v29 = vld [vmem:[%s3136_s1 + $0x180] sm:$0xff]   ;;  %v92_v49 = vld [vmem:[%s3135_s0 + $0x230] sm:$0xff]  ;;  %v101_v52 = vld [vmem:[%s3135_s0 + $0x278] sm:$0xff] }
  0x1f   :  { %v102_v42 = vld [vmem:[%s3135_s0 + $0x280] sm:$0xff]  ;;  %v2238_v53 = vld [vmem:[%s3136_s1 + $0x178] sm:$0xff]   ;;  %v107_v54 = vld [vmem:[%s3135_s0 + $0x2a8] sm:$0xff] }
  0x20   :  { %1839 = vmatpush3.bf16.msra.mxu0 %v2221_v30  ;;  %v157_v30 = vpack.c.bf16 %v73_v21, %v66_v20  ;;  %v172_v48 = vpack.c.bf16 %v102_v42, %v95_v41  ;;  %v114_v55 = vld [vmem:[%s3135_s0 + $0x2e0] sm:$0xff]  ;;  %v113_v0 = vld [vmem:[%s3135_s0 + $0x2d8] sm:$0xff]  ;;  %v115_v2 = vld [vmem:[%s3135_s0 + $0x2e8] sm:$0xff] }
  0x21   :  { %1903 = vmatpush3.bf16.msra.mxu1 %v2222_v31  ;;  %1952 = vmatprep.subr.bf16.mxu0 %v2223_v44  ;;  %v163_v31 = vpack.c.bf16 %v86_v23, %v79_v22  ;;  %v2236_v44 = vld [vmem:[%s3136_s1 + $0x170] sm:$0xff]   ;;  %v177_v61 = vpack.c.bf16 %v114_v55, %v107_v54  ;;  %v106_v63 = vld [vmem:[%s3135_s0 + $0x2a0] sm:$0xff]  ;;  %v121_v3 = vld [vmem:[%s3135_s0 + $0x318] sm:$0xff] }
  0x22   :  { %2073 = vmatprep.subr.bf16.mxu1 %v2233_v29  ;;  %v128_v4 = vld [vmem:[%s3135_s0 + $0x350] sm:$0xff]  ;;  %v176_v7 = vpack.c.bf16 %v113_v0, %v106_v63  ;;  %v35_v18 = vld [vmem:[%s3135_s0 + $0x68] sm:$0xff]  ;;  %v26_v23 = vld [vmem:[%s3135_s0 + $0x20] sm:$0xff] }
  0x23   :  { %640 = vmatmul.mubr.bf16.vlgmr.msra.gmra.mrb[0].mxu0 %v134_v40  ;;  %v100_v40 = vld [vmem:[%s3135_s0 + $0x270] sm:$0xff]  ;;  %v184_v9 = vpack.c.bf16 %v128_v4, %v121_v3  ;;  %v33_v24 = vld [vmem:[%s3135_s0 + $0x58] sm:$0xff]  ;;  %v42_v25 = vld [vmem:[%s3135_s0 + $0xa0] sm:$0xff] }
  0x24   :  { %737 = vmatmul.mubr.bf16.vlgmr.msra.gmra.mrb[0].mxu1 %v136_v43  ;;  %1953 = vmatpush3.bf16.msra.mxu0 %v2224_v45  ;;  %v162_v43 = vpack.c.bf16 %v85_v36, %v78_v35  ;;  %v164_v45 = vpack.c.bf16 %v87_v38, %v80_v37  ;;  %v170_v46 = vpack.c.bf16 %v100_v40, %v93_v39  ;;  %v120_v11 = vld [vmem:[%s3135_s0 + $0x310] sm:$0xff]  ;;  %v47_v36 = vld [vmem:[%s3135_s0 + $0xc8] sm:$0xff]  ;;  %v62_v38 = vld [vmem:[%s3135_s0 + $0x140] sm:$0xff] }
  0x25   :  { %647 = vmatprep.mubr.bf16.mxu0 %v142_v50  ;;  %744 = vmatprep.mubr.bf16.mxu1 %v144_v51  ;;  %v99_v50 = vld [vmem:[%s3135_s0 + $0x268] sm:$0xff]  ;;  %v94_v51 = vld [vmem:[%s3135_s0 + $0x240] sm:$0xff]  ;;  %v40_v35 = vld [vmem:[%s3135_s0 + $0x90] sm:$0xff] }
  0x26   :  { %1954 = vmatprep.subr.bf16.mxu0 %v2225_v57  ;;  %2074 = vmatpush3.bf16.msra.mxu1 %v2233_v29  ;;  %v109_v57 = vld [vmem:[%s3135_s0 + $0x2b8] sm:$0xff]  ;;  %v171_v60 = vpack.c.bf16 %v101_v52, %v94_v51  ;;  %v56_v29 = vld [vmem:[%s3135_s0 + $0x110] sm:$0xff]  ;;  %v55_v37 = vld [vmem:[%s3135_s0 + $0x108] sm:$0xff] }
  0x27   :  { %v70_v39 = vld [vmem:[%s3135_s0 + $0x180] sm:$0xff]  ;;  %v77_v40 = vld [vmem:[%s3135_s0 + $0x1b8] sm:$0xff] }
  0x28   :  { %1955 = vmatpush3.bf16.msra.mxu0 %v2226_v59  ;;  %v169_v59 = vpack.c.bf16 %v99_v50, %v92_v49 }
  0x29   :  { %1956 = vmatprep.subr.bf16.mxu0 %v2227_v5  ;;  %v123_v5 = vld [vmem:[%s3135_s0 + $0x328] sm:$0xff] }
  0x2b   :  { %648 = vmatmul.mubr.bf16.gmra.mrb[4].mxu0 %v141_v56  ;;  %v2239_v56 = vld [vmem:[%s3136_s1 + $0x138] sm:$0xff]  }
  0x2c   :  { %745 = vmatmul.mubr.bf16.gmra.mrb[4].mxu1 %v143_v58  ;;  %655 = vmatprep.mubr.bf16.mxu0 %v149_v62  ;;  %v116_v58 = vld [vmem:[%s3135_s0 + $0x2f0] sm:$0xff] }
  0x2d   :  { %752 = vmatprep.mubr.bf16.mxu1 %v151_v1  ;;  %1957 = vmatpush3.bf16.msra.mxu0 %v2228_v6  ;;  %v179_v62 = vpack.c.bf16 %v116_v58, %v109_v57  ;;  %v108_v1 = vld [vmem:[%s3135_s0 + $0x2b0] sm:$0xff]  ;;  %v130_v6 = vld [vmem:[%s3135_s0 + $0x360] sm:$0xff] }
  0x2e   :  { %1958 = vmatprep.subr.bf16.mxu0 %v2229_v15  ;;  %v178_v8 = vpack.c.bf16 %v115_v2, %v108_v1  ;;  %v186_v10 = vpack.c.bf16 %v130_v6, %v123_v5  ;;  %v27_v15 = vld [vmem:[%s3135_s0 + $0x28] sm:$0xff] }
  0x31   :  { %1959 = vmatpush3.bf16.msra.mxu0 %v2230_v17  ;;  %v28_v17 = vld [vmem:[%s3135_s0 + $0x30] sm:$0xff] }
  0x32   :  { %1960 = vmatprep.subr.bf16.mxu0 %v2231_v26  ;;  %v140_v22 = vpack.c.bf16 %v35_v18, %v28_v17  ;;  %v49_v26 = vld [vmem:[%s3135_s0 + $0xd8] sm:$0xff] }
  0x33   :  { %656 = vmatmul.mubr.bf16.gmra.mrb[8].mxu0 %v148_v12  ;;  %v127_v12 = vld [vmem:[%s3135_s0 + $0x348] sm:$0xff] }
  0x34   :  { %753 = vmatmul.mubr.bf16.gmra.mrb[8].mxu1 %v150_v13  ;;  %663 = vmatprep.mubr.bf16.mxu0 %v156_v14  ;;  %v122_v13 = vld [vmem:[%s3135_s0 + $0x320] sm:$0xff]  ;;  %v129_v14 = vld [vmem:[%s3135_s0 + $0x358] sm:$0xff]  ;;  %v183_v19 = vpack.c.bf16 %v127_v12, %v120_v11 }
  0x35   :  { %760 = vmatprep.mubr.bf16.mxu1 %v158_v16  ;;  %1961 = vmatpush3.bf16.msra.mxu0 %v2232_v27  ;;  %v34_v16 = vld [vmem:[%s3135_s0 + $0x60] sm:$0xff]  ;;  %v185_v20 = vpack.c.bf16 %v129_v14, %v122_v13  ;;  %v41_v27 = vld [vmem:[%s3135_s0 + $0x98] sm:$0xff] }
  0x36   :  { %1962 = vmatprep.subr.bf16.mxu0 %v2234_v33  ;;  %v139_v21 = vpack.c.bf16 %v34_v16, %v27_v15 }
  0x39   :  { %1963 = vmatpush3.bf16.msra.mxu0 %v2235_v34 }
  0x3a   :  { %1964 = vmatprep.subr.bf16.mxu0 %v2236_v44 }
  0x3b   :  { %664 = vmatmul.mubr.bf16.gmra.mrb[12].mxu0 %v155_v28  ;;  %v48_v28 = vld [vmem:[%s3135_s0 + $0xd0] sm:$0xff] }
  0x3c   :  { %761 = vmatmul.mubr.bf16.gmra.mrb[12].mxu1 %v157_v30  ;;  %671 = vmatprep.mubr.bf16.mxu0 %v163_v31  ;;  %v63_v30 = vld [vmem:[%s3135_s0 + $0x148] sm:$0xff]  ;;  %v138_v31 = vpack.c.bf16 %v33_v24, %v26_v23  ;;  %v146_v33 = vpack.c.bf16 %v48_v28, %v41_v27 }
  0x3d   :  { %768 = vmatprep.mubr.bf16.mxu1 %v165_v32  ;;  %1965 = vmatpush3.bf16.msra.mxu0 %v2237_v47  ;;  %v147_v32 = vpack.c.bf16 %v49_v26, %v42_v25  ;;  %v154_v34 = vpack.c.bf16 %v63_v30, %v56_v29 }
  0x3e   :  { %1966 = vmatprep.subr.bf16.mxu0 %v2238_v53 }
  0x41   :  { %1967 = vmatpush3.bf16.msra.mxu0 %v2239_v56 }
  0x43   :  { %672 = vmatmul.mubr.bf16.gmra.mrb[16].mxu0 %v162_v43 }
  0x44   :  { %769 = vmatmul.mubr.bf16.gmra.mrb[16].mxu1 %v164_v45  ;;  %679 = vmatprep.mubr.bf16.mxu0 %v170_v46 }
  0x45   :  { %776 = vmatprep.mubr.bf16.mxu1 %v172_v48 }
  0x4b   :  { %680 = vmatmul.mubr.bf16.gmra.mrb[20].mxu0 %v169_v59 }
  0x4c   :  { %777 = vmatmul.mubr.bf16.gmra.mrb[20].mxu1 %v171_v60  ;;  %687 = vmatprep.mubr.bf16.mxu0 %v177_v61 }
  0x4d   :  { %784 = vmatprep.mubr.bf16.mxu1 %v179_v62 }
  0x53   :  { %688 = vmatmul.mubr.bf16.gmra.mrb[24].mxu0 %v176_v7 }
  0x54   :  { %785 = vmatmul.mubr.bf16.gmra.mrb[24].mxu1 %v178_v8  ;;  %695 = vmatprep.mubr.bf16.mxu0 %v184_v9 }
  0x55   :  { %792 = vmatprep.mubr.bf16.mxu1 %v186_v10 }
  0x5b   :  { %696 = vmatmul.mubr.bf16.gmra.mrb[28].mxu0 %v183_v19 }
  0x5c   :  { %793 = vmatmul.mubr.bf16.gmra.mrb[28].mxu1 %v185_v20  ;;  %833 = vmatprep.mubr.bf16.mxu0 %v139_v21 }
  0x5d   :  { %2075 = vmatprep.mubr.msk.bf16.mxu1 %vm582_vm0, %v140_v22 }
  0x63   :  { %834 = vmatmul.mubr.bf16.vlgmr.msra.gmra.mrb[32].mxu0 %v138_v31 }
  0x64   :  { %2076 = vmatmul.mubr.msk.bf16.vlgmr.msra.gmra.mrb[32].mxu1 %vm582_vm0, %v147_v32  ;;  %841 = vmatprep.mubr.bf16.mxu0 %v146_v33 }
  0x65   :  { %2079 = vmatprep.mubr.msk.bf16.mxu1 %vm582_vm0, %v154_v34 }
  0x66   :  { %10 = vsyncpa [#allocation3], 0  ;;  %v84_v41 = vld [vmem:[%s3135_s0 + $0x1f0] sm:$0xff]  ;;  %v91_v42 = vld [vmem:[%s3135_s0 + $0x228] sm:$0xff]  ;;  %v145_v43 = vpack.c.bf16 %v47_v36, %v40_v35  ;;  %v153_v44 = vpack.c.bf16 %v62_v38, %v55_v37  ;;  %v161_v45 = vpack.c.bf16 %v77_v40, %v70_v39 }
  0x67   :  { %v168_v46 = vpack.c.bf16 %v91_v42, %v84_v41  ;;  %v54_v47 = vld [vmem:[%s3135_s0 + $0x100] sm:$0xff]  ;;  %v61_v48 = vld [vmem:[%s3135_s0 + $0x138] sm:$0xff]  ;;  %v76_v50 = vld [vmem:[%s3135_s0 + $0x1b0] sm:$0xff] }
  0x68   :  { %v69_v49 = vld [vmem:[%s3135_s0 + $0x178] sm:$0xff]  ;;  %v98_v51 = vld [vmem:[%s3135_s0 + $0x260] sm:$0xff]  ;;  %v112_v53 = vld [vmem:[%s3135_s0 + $0x2d0] sm:$0xff]  ;;  %v152_v55 = vpack.c.bf16 %v61_v48, %v54_v47 }
  0x69   :  { %v105_v52 = vld [vmem:[%s3135_s0 + $0x298] sm:$0xff]  ;;  %v119_v54 = vld [vmem:[%s3135_s0 + $0x308] sm:$0xff]  ;;  %v160_v56 = vpack.c.bf16 %v76_v50, %v69_v49  ;;  %v68_v59 = vld [vmem:[%s3135_s0 + $0x170] sm:$0xff] }
  0x6a   :  { %v175_v57 = vpack.c.bf16 %v105_v52, %v98_v51  ;;  %v182_v58 = vpack.c.bf16 %v119_v54, %v112_v53  ;;  %v75_v60 = vld [vmem:[%s3135_s0 + $0x1a8] sm:$0xff]  ;;  %v90_v62 = vld [vmem:[%s3135_s0 + $0x220] sm:$0xff]  ;;  %v133_v0 = vld [vmem:[%s3135_s0 + $0x378] sm:$0xff] }
  0x6b   :  { %842 = vmatmul.mubr.bf16.gmra.mrb[36].mxu0 %v145_v43  ;;  %v83_v61 = vld [vmem:[%s3135_s0 + $0x1e8] sm:$0xff]  ;;  %v126_v63 = vld [vmem:[%s3135_s0 + $0x340] sm:$0xff]  ;;  %v159_v1 = vpack.c.bf16 %v75_v60, %v68_v59  ;;  %v89_v5 = vld [vmem:[%s3135_s0 + $0x218] sm:$0xff] }
  0x6c   :  { %849 = vmatprep.mubr.bf16.mxu0 %v153_v44  ;;  %2080 = vmatmul.mubr.msk.bf16.gmra.mrb[36].mxu1 %vm582_vm0, %v161_v45  ;;  %v167_v2 = vpack.c.bf16 %v90_v62, %v83_v61  ;;  %v189_v3 = vpack.c.bf16 %v133_v0, %v126_v63  ;;  %v82_v4 = vld [vmem:[%s3135_s0 + $0x1e0] sm:$0xff]  ;;  %v97_v6 = vld [vmem:[%s3135_s0 + $0x258] sm:$0xff]  ;;  %v104_v7 = vld [vmem:[%s3135_s0 + $0x290] sm:$0xff] }
  0x6d   :  { %2083 = vmatprep.mubr.msk.bf16.mxu1 %vm582_vm0, %v168_v46  ;;  %v166_v8 = vpack.c.bf16 %v89_v5, %v82_v4  ;;  %v174_v9 = vpack.c.bf16 %v104_v7, %v97_v6  ;;  %v96_v10 = vld [vmem:[%s3135_s0 + $0x250] sm:$0xff]  ;;  %v103_v11 = vld [vmem:[%s3135_s0 + $0x288] sm:$0xff]  ;;  %v118_v13 = vld [vmem:[%s3135_s0 + $0x300] sm:$0xff] }
  0x6e   :  { %v111_v12 = vld [vmem:[%s3135_s0 + $0x2c8] sm:$0xff]  ;;  %v173_v14 = vpack.c.bf16 %v103_v11, %v96_v10  ;;  %v110_v16 = vld [vmem:[%s3135_s0 + $0x2c0] sm:$0xff]  ;;  %v117_v17 = vld [vmem:[%s3135_s0 + $0x2f8] sm:$0xff] }
  0x6f   :  { %v181_v15 = vpack.c.bf16 %v118_v13, %v111_v12  ;;  %v125_v18 = vld [vmem:[%s3135_s0 + $0x338] sm:$0xff]  ;;  %v132_v19 = vld [vmem:[%s3135_s0 + $0x370] sm:$0xff]  ;;  %v180_v20 = vpack.c.bf16 %v117_v17, %v110_v16  ;;  %v131_v23 = vld [vmem:[%s3135_s0 + $0x368] sm:$0xff] }
  0x70   :  { %v188_v21 = vpack.c.bf16 %v132_v19, %v125_v18  ;;  %v124_v22 = vld [vmem:[%s3135_s0 + $0x330] sm:$0xff]  ;;  %v2240_v25 = vld [vmem:[%s3137_s2] sm:$0xff]   ;;  %v2241_v26 = vld [vmem:[%s3137_s2 + $0x8] sm:$0xff]  }
  0x71   :  { %v187_v24 = vpack.c.bf16 %v131_v23, %v124_v22  ;;  %2091 = vmatprep.subr.bf16.mxu1 %v2240_v25  ;;  %v2242_v27 = vld [vmem:[%s3137_s2 + $0x10] sm:$0xff]   ;;  %v2243_v28 = vld [vmem:[%s3137_s2 + $0x18] sm:$0xff]   ;;  %v2244_v29 = vld [vmem:[%s3137_s2 + $0x20] sm:$0xff]  }
  0x72   :  { %2092 = vmatpush3.bf16.msra.mxu1 %v2240_v25  ;;  %v2245_v30 = vld [vmem:[%s3137_s2 + $0x28] sm:$0xff]   ;;  %v2246_v31 = vld [vmem:[%s3137_s2 + $0x30] sm:$0xff]   ;;  %v2247_v32 = vld [vmem:[%s3137_s2 + $0x38] sm:$0xff]  }
  0x73   :  { %850 = vmatmul.mubr.bf16.gmra.mrb[40].mxu0 %v152_v55  ;;  %2093 = vmatprep.subr.bf16.mxu1 %v2241_v26  ;;  %v2248_v46 = vld [vmem:[%s3137_s2 + $0x40] sm:$0xff]   ;;  %v2249_v47 = vld [vmem:[%s3137_s2 + $0x48] sm:$0xff]   ;;  %v2250_v55 = vld [vmem:[%s3137_s2 + $0x50] sm:$0xff]  }
  0x74   :  { %857 = vmatprep.mubr.bf16.mxu0 %v160_v56  ;;  %2084 = vmatmul.mubr.msk.bf16.gmra.mrb[40].mxu1 %vm582_vm0, %v175_v57  ;;  %v2251_v63 = vld [vmem:[%s3137_s2 + $0x58] sm:$0xff]   ;;  %v2252_v7 = vld [vmem:[%s3137_s2 + $0x60] sm:$0xff]  }
  0x75   :  { %2087 = vmatprep.mubr.msk.bf16.mxu1 %vm582_vm0, %v182_v58  ;;  %2123 = vmatprep.subr.bf16.mxu0 %v2248_v46 }
  0x76   :  { %2094 = vmatpush3.bf16.msra.mxu1 %v2241_v26  ;;  %2124 = vmatpush3.bf16.msra.mxu0 %v2248_v46 }
  0x77   :  { %2095 = vmatprep.subr.bf16.mxu1 %v2242_v27  ;;  %2125 = vmatprep.subr.bf16.mxu0 %v2249_v47 }
  0x7a   :  { %2096 = vmatpush3.bf16.msra.mxu1 %v2242_v27  ;;  %2126 = vmatpush3.bf16.msra.mxu0 %v2249_v47 }
  0x7b   :  { %858 = vmatmul.mubr.bf16.gmra.mrb[44].mxu0 %v159_v1  ;;  %2097 = vmatprep.subr.bf16.mxu1 %v2243_v28 }
  0x7c   :  { %865 = vmatprep.mubr.bf16.mxu0 %v167_v2  ;;  %2088 = vmatmul.mubr.msk.bf16.gmra.mrb[44].mxu1 %vm582_vm0, %v189_v3 }
  0x7d   :  { %2127 = vmatprep.subr.bf16.mxu0 %v2250_v55 }
  0x7e   :  { %2098 = vmatpush3.bf16.msra.mxu1 %v2243_v28  ;;  %2128 = vmatpush3.bf16.msra.mxu0 %v2250_v55 }
  0x7f   :  { %2099 = vmatprep.subr.bf16.mxu1 %v2244_v29  ;;  %2129 = vmatprep.subr.bf16.mxu0 %v2251_v63 }
  0x82   :  { %2100 = vmatpush3.bf16.msra.mxu1 %v2244_v29  ;;  %2130 = vmatpush3.bf16.msra.mxu0 %v2251_v63 }
  0x83   :  { %866 = vmatmul.mubr.bf16.gmra.mrb[48].mxu0 %v166_v8  ;;  %2101 = vmatprep.subr.bf16.mxu1 %v2245_v30 }
  0x84   :  { %873 = vmatprep.mubr.bf16.mxu0 %v174_v9  ;;  %2131 = vmatprep.subr.bf16.mxu0 %v2252_v7 }
  0x86   :  { %2102 = vmatpush3.bf16.msra.mxu1 %v2245_v30  ;;  %2132 = vmatpush3.bf16.msra.mxu0 %v2252_v7 }
  0x87   :  { %2103 = vmatprep.subr.bf16.mxu1 %v2246_v31 }
  0x8a   :  { %2104 = vmatpush3.bf16.msra.mxu1 %v2246_v31 }
  0x8b   :  { %874 = vmatmul.mubr.bf16.gmra.mrb[52].mxu0 %v173_v14  ;;  %2105 = vmatprep.subr.bf16.mxu1 %v2247_v32 }
  0x8c   :  { %881 = vmatprep.mubr.bf16.mxu0 %v181_v15  ;;  %v2253_v15 = vld [vmem:[%s3137_s2 + $0x68] sm:$0xff]  }
  0x8d   :  { %2133 = vmatprep.subr.bf16.mxu0 %v2253_v15 }
  0x8e   :  { %2106 = vmatpush3.bf16.msra.mxu1 %v2247_v32  ;;  %2134 = vmatpush3.bf16.msra.mxu0 %v2253_v15 }
  0x93   :  { %882 = vmatmul.mubr.bf16.gmra.mrb[56].mxu0 %v180_v20 }
  0x94   :  { %889 = vmatprep.mubr.bf16.mxu0 %v188_v21 }
  0x9b   :  { %890 = vmatmul.mubr.bf16.gmra.mrb[60].mxu0 %v187_v24 }
  0xf6   :  { %v1840_v33 = vpop.f32.mrb[0].mxu0 }
  0xf7   :  { %v1904_v34 = vpop.f32.mrb[0].mxu1  ;;  %v1841_v35 = vpop.f32.mrb[1].mxu0 }
  0xf8   :  { %v1842_v36 = vadd.f32 %v1841_v35, %v1840_v33  ;;  %v1905_v37 = vpop.f32.mrb[1].mxu1  ;;  %v1843_v38 = vpop.f32.mrb[2].mxu0 }
  0xf9   :  { %v1906_v39 = vadd.f32 %v1905_v37, %v1904_v34  ;;  %v1907_v40 = vpop.f32.mrb[2].mxu1  ;;  %v1844_v41 = vpop.f32.mrb[3].mxu0 }
  0xfa   :  { %v1845_v42 = vadd.f32 %v1844_v41, %v1843_v38  ;;  %v1908_v43 = vpop.f32.mrb[3].mxu1 }
  0xfb   :  { %v2901_v44 = vadd.f32 %v1906_v39, %v1842_v36  ;;  %v1909_v45 = vadd.f32 %v1908_v43, %v1907_v40 }
  0xfd   :  { %v2909_v48 = vadd.f32 %v1909_v45, %v1845_v42 }
  0xfe   :  { %v1846_v49 = vpop.f32.mrb[4].mxu0 }
  0xff   :  { %v1910_v50 = vpop.f32.mrb[4].mxu1  ;;  %v1847_v51 = vpop.f32.mrb[5].mxu0 }
 0x100   :  { %v1848_v52 = vadd.f32 %v1847_v51, %v1846_v49  ;;  %v1911_v53 = vpop.f32.mrb[5].mxu1  ;;  %v1849_v54 = vpop.f32.mrb[6].mxu0 }
 0x101   :  { %v1912_v56 = vadd.f32 %v1911_v53, %v1910_v50  ;;  %v1913_v57 = vpop.f32.mrb[6].mxu1  ;;  %v1850_v58 = vpop.f32.mrb[7].mxu0 }
 0x102   :  { %v1851_v59 = vadd.f32 %v1850_v58, %v1849_v54  ;;  %v1914_v60 = vpop.f32.mrb[7].mxu1 }
 0x103   :  { %v2914_v61 = vadd.f32 %v1912_v56, %v1848_v52  ;;  %v1915_v62 = vadd.f32 %v1914_v60, %v1913_v57 }
 0x105   :  { %v2919_v0 = vadd.f32 %v1915_v62, %v1851_v59 }
 0x106   :  { %v1852_v1 = vpop.f32.mrb[8].mxu0 }
 0x107   :  { %v1916_v2 = vpop.f32.mrb[8].mxu1  ;;  %v1853_v3 = vpop.f32.mrb[9].mxu0 }
 0x108   :  { %v1854_v4 = vadd.f32 %v1853_v3, %v1852_v1  ;;  %v1917_v5 = vpop.f32.mrb[9].mxu1  ;;  %v1855_v6 = vpop.f32.mrb[10].mxu0 }
 0x109   :  { %v1918_v8 = vadd.f32 %v1917_v5, %v1916_v2  ;;  %v1919_v9 = vpop.f32.mrb[10].mxu1  ;;  %v1856_v10 = vpop.f32.mrb[11].mxu0 }
 0x10a   :  { %v1857_v11 = vadd.f32 %v1856_v10, %v1855_v6  ;;  %v1920_v12 = vpop.f32.mrb[11].mxu1 }
 0x10b   :  { %v2924_v13 = vadd.f32 %v1918_v8, %v1854_v4  ;;  %v1921_v14 = vadd.f32 %v1920_v12, %v1919_v9 }
 0x10d   :  { %v2929_v16 = vadd.f32 %v1921_v14, %v1857_v11 }
 0x10e   :  { %v1858_v17 = vpop.f32.mrb[12].mxu0 }
 0x10f   :  { %v1922_v18 = vpop.f32.mrb[12].mxu1  ;;  %v1859_v19 = vpop.f32.mrb[13].mxu0 }
 0x110   :  { %v1860_v20 = vadd.f32 %v1859_v19, %v1858_v17  ;;  %v1923_v21 = vpop.f32.mrb[13].mxu1  ;;  %v1861_v22 = vpop.f32.mrb[14].mxu0 }
 0x111   :  { %v1924_v23 = vadd.f32 %v1923_v21, %v1922_v18  ;;  %v1925_v24 = vpop.f32.mrb[14].mxu1  ;;  %v1862_v25 = vpop.f32.mrb[15].mxu0 }
 0x112   :  { %v1863_v26 = vadd.f32 %v1862_v25, %v1861_v22  ;;  %v1926_v27 = vpop.f32.mrb[15].mxu1 }
 0x113   :  { %v2931_v28 = vadd.f32 %v1924_v23, %v1860_v20  ;;  %v1927_v29 = vadd.f32 %v1926_v27, %v1925_v24 }
 0x115   :  { %v2933_v30 = vadd.f32 %v1927_v29, %v1863_v26 }
 0x116   :  { %v1864_v31 = vpop.f32.mrb[16].mxu0 }
 0x117   :  { %v1928_v32 = vpop.f32.mrb[16].mxu1  ;;  %v1865_v33 = vpop.f32.mrb[17].mxu0 }
 0x118   :  { %v1866_v34 = vadd.f32 %v1865_v33, %v1864_v31  ;;  %v1929_v35 = vpop.f32.mrb[17].mxu1  ;;  %v1867_v36 = vpop.f32.mrb[18].mxu0 }
 0x119   :  { %v1930_v37 = vadd.f32 %v1929_v35, %v1928_v32  ;;  %v1931_v38 = vpop.f32.mrb[18].mxu1  ;;  %v1868_v39 = vpop.f32.mrb[19].mxu0 }
 0x11a   :  { %v1869_v40 = vadd.f32 %v1868_v39, %v1867_v36  ;;  %v1932_v41 = vpop.f32.mrb[19].mxu1 }
 0x11b   :  { %v2935_v42 = vadd.f32 %v1930_v37, %v1866_v34  ;;  %v1933_v43 = vadd.f32 %v1932_v41, %v1931_v38 }
 0x11d   :  { %v2937_v45 = vadd.f32 %v1933_v43, %v1869_v40 }
 0x11e   :  { %v1870_v46 = vpop.f32.mrb[20].mxu0 }
 0x11f   :  { %v1934_v47 = vpop.f32.mrb[20].mxu1  ;;  %v1871_v49 = vpop.f32.mrb[21].mxu0 }
 0x120   :  { %v1872_v50 = vadd.f32 %v1871_v49, %v1870_v46  ;;  %v1935_v51 = vpop.f32.mrb[21].mxu1  ;;  %v1873_v52 = vpop.f32.mrb[22].mxu0 }
 0x121   :  { %v1936_v53 = vadd.f32 %v1935_v51, %v1934_v47  ;;  %v1937_v54 = vpop.f32.mrb[22].mxu1  ;;  %v1874_v55 = vpop.f32.mrb[23].mxu0 }
 0x122   :  { %v1875_v56 = vadd.f32 %v1874_v55, %v1873_v52  ;;  %v1938_v57 = vpop.f32.mrb[23].mxu1 }
 0x123   :  { %v2939_v58 = vadd.f32 %v1936_v53, %v1872_v50  ;;  %v1939_v59 = vadd.f32 %v1938_v57, %v1937_v54 }
 0x125   :  { %v2941_v60 = vadd.f32 %v1939_v59, %v1875_v56 }
 0x126   :  { %v1876_v62 = vpop.f32.mrb[24].mxu0 }
 0x127   :  { %v1940_v63 = vpop.f32.mrb[24].mxu1  ;;  %v1877_v1 = vpop.f32.mrb[25].mxu0 }
 0x128   :  { %v1878_v2 = vadd.f32 %v1877_v1, %v1876_v62  ;;  %v1941_v3 = vpop.f32.mrb[25].mxu1  ;;  %v1879_v4 = vpop.f32.mrb[26].mxu0 }
 0x129   :  { %v1942_v5 = vadd.f32 %v1941_v3, %v1940_v63  ;;  %v1943_v6 = vpop.f32.mrb[26].mxu1  ;;  %v1880_v7 = vpop.f32.mrb[27].mxu0  ;;  %v2352_v63 = vmov 0  }
 0x12a   :  { %v1881_v8 = vadd.f32 %v1880_v7, %v1879_v4  ;;  %v1944_v9 = vpop.f32.mrb[27].mxu1 }
 0x12b   :  { %v2943_v10 = vadd.f32 %v1942_v5, %v1878_v2  ;;  %v1945_v11 = vadd.f32 %v1944_v9, %v1943_v6 }
 0x12d   :  { %v2945_v12 = vadd.f32 %v1945_v11, %v1881_v8 }
 0x12e   :  { %v1882_v14 = vpop.f32.mrb[28].mxu0 }
 0x12f   :  { %v1946_v15 = vpop.f32.mrb[28].mxu1  ;;  %v1883_v17 = vpop.f32.mrb[29].mxu0 }
 0x130   :  { %v1884_v18 = vadd.f32 %v1883_v17, %v1882_v14  ;;  %v1947_v19 = vpop.f32.mrb[29].mxu1  ;;  %v1885_v20 = vpop.f32.mrb[30].mxu0 }
 0x131   :  { %v1948_v21 = vadd.f32 %v1947_v19, %v1946_v15  ;;  %v1949_v22 = vpop.f32.mrb[30].mxu1  ;;  %v1886_v23 = vpop.f32.mrb[31].mxu0 }
 0x132   :  { %v1887_v24 = vadd.f32 %v1886_v23, %v1885_v20  ;;  %v1950_v25 = vpop.f32.mrb[31].mxu1 }
 0x133   :  { %v2947_v26 = vadd.f32 %v1948_v21, %v1884_v18  ;;  %v1951_v27 = vadd.f32 %v1950_v25, %v1949_v22 }
 0x135   :  { %v2949_v29 = vadd.f32 %v1951_v27, %v1887_v24 }
 0x136   :  { %v1968_v31 = vpop.f32.mrb[32].mxu0 }
 0x137   :  { %v1969_v32 = vpop.f32.mrb[33].mxu0  ;;  %v2077_v33 = vpop.f32.mrb[32].mxu1 }
 0x138   :  { %v1970_v34 = vadd.f32 %v1969_v32, %v1968_v31  ;;  %v1971_v35 = vpop.f32.mrb[34].mxu0  ;;  %v932_v36 = vpop.f32.mrb[33].mxu1 }
 0x139   :  { %v1972_v37 = vpop.f32.mrb[35].mxu0  ;;  %v2078_v38 = vpop.f32.mrb[34].mxu1 }
 0x13a   :  { %v1973_v39 = vadd.f32 %v1972_v37, %v1971_v35  ;;  %v836_v40 = vadd.f32 %v1970_v34, %v2901_v44  ;;  %v935_v41 = vpop.f32.mrb[35].mxu1 }
 0x13c   :  { %v933_v43 = vadd.f32 %v932_v36, %v836_v40  ;;  %v839_v46 = vadd.f32 %v1973_v39, %v2909_v48 }
 0x13e   :  { %v936_v47 = vadd.f32 %v935_v41, %v839_v46  ;;  %v1974_v49 = vpop.f32.mrb[36].mxu0 }
 0x13f   :  { %v1975_v50 = vpop.f32.mrb[37].mxu0  ;;  %v2081_v51 = vpop.f32.mrb[36].mxu1 }
 0x140   :  { %v995_v52 = vpack.c.bf16 %v936_v47, %v933_v43  ;;  %v1976_v53 = vadd.f32 %v1975_v50, %v1974_v49  ;;  %v1977_v54 = vpop.f32.mrb[38].mxu0  ;;  %v948_v55 = vpop.f32.mrb[37].mxu1 }
 0x141   :  { %v1978_v56 = vpop.f32.mrb[39].mxu0  ;;  %v2082_v57 = vpop.f32.mrb[38].mxu1 }
 0x142   :  { %v844_v59 = vadd.f32 %v1976_v53, %v2914_v61  ;;  %v1979_v62 = vadd.f32 %v1978_v56, %v1977_v54  ;;  %v1003_v44 = vmax.bf16 %v2352_v63, %v995_v52  ;;  %v951_v1 = vpop.f32.mrb[39].mxu1 }
 0x144   :  { %v941_v2 = vadd.f32 %v2077_v33, %v844_v59  ;;  %v847_v48 = vadd.f32 %v1979_v62, %v2919_v0  ;;  %2107 = vmatprep.mubr.bf16.mxu1 %v1003_v44 }
 0x146   :  { %v944_v3 = vadd.f32 %v2078_v38, %v847_v48  ;;  %v1980_v4 = vpop.f32.mrb[40].mxu0 }
 0x147   :  { %v1981_v5 = vpop.f32.mrb[41].mxu0  ;;  %v2085_v6 = vpop.f32.mrb[40].mxu1 }
 0x148   :  { %v996_v7 = vpack.c.bf16 %v944_v3, %v941_v2  ;;  %v1982_v8 = vadd.f32 %v1981_v5, %v1980_v4  ;;  %v1983_v9 = vpop.f32.mrb[42].mxu0  ;;  %v964_v11 = vpop.f32.mrb[41].mxu1 }
 0x149   :  { %v1984_v14 = vpop.f32.mrb[43].mxu0  ;;  %v2086_v15 = vpop.f32.mrb[42].mxu1 }
 0x14a   :  { %v1004_v61 = vmax.bf16 %v2352_v63, %v996_v7  ;;  %v1985_v17 = vadd.f32 %v1984_v14, %v1983_v9  ;;  %v852_v18 = vadd.f32 %v1982_v8, %v2924_v13  ;;  %v967_v19 = vpop.f32.mrb[43].mxu1 }
 0x14c   :  { %v949_v20 = vadd.f32 %v948_v55, %v852_v18  ;;  %2108 = vmatmul.mubr.bf16.vlgmr.msra.gmra.mrb[48].mxu1 %v1004_v61  ;;  %v855_v0 = vadd.f32 %v1985_v17, %v2929_v16 }
 0x14e   :  { %v952_v21 = vadd.f32 %v951_v1, %v855_v0  ;;  %v1986_v22 = vpop.f32.mrb[44].mxu0 }
 0x14f   :  { %v1987_v23 = vpop.f32.mrb[45].mxu0  ;;  %v2959_v24 = vpop.f32.mrb[44].mxu1 }
 0x150   :  { %v997_v25 = vpack.c.bf16 %v952_v21, %v949_v20  ;;  %v1988_v27 = vadd.f32 %v1987_v23, %v1986_v22  ;;  %v1989_v31 = vpop.f32.mrb[46].mxu0  ;;  %v980_v32 = vpop.f32.mrb[45].mxu1 }
 0x151   :  { %v1990_v33 = vpop.f32.mrb[47].mxu0  ;;  %v2090_v34 = vpop.f32.mrb[46].mxu1 }
 0x152   :  { %v860_v35 = vadd.f32 %v1988_v27, %v2931_v28  ;;  %v1991_v36 = vadd.f32 %v1990_v33, %v1989_v31  ;;  %v1005_v13 = vmax.bf16 %v2352_v63, %v997_v25  ;;  %v983_v37 = vpop.f32.mrb[47].mxu1  ;;  %v2258_v33 = vld [vmem:[%s3138_s3 + $0x10] sm:$0xff]  }
 0x154   :  { %v957_v38 = vadd.f32 %v2081_v51, %v860_v35  ;;  %v863_v16 = vadd.f32 %v1991_v36, %v2933_v30  ;;  %2111 = vmatprep.mubr.bf16.mxu1 %v1005_v13  ;;  %v2260_v35 = vld [vmem:[%s3138_s3 + $0x20] sm:$0xff]   ;;  %v2261_v36 = vld [vmem:[%s3138_s3 + $0x28] sm:$0xff]  }
 0x156   :  { %v960_v39 = vadd.f32 %v2082_v57, %v863_v16  ;;  %v1992_v40 = vpop.f32.mrb[48].mxu0 }
 0x157   :  { %v1993_v41 = vpop.f32.mrb[49].mxu0 }
 0x158   :  { %v1994_v43 = vadd.f32 %v1993_v41, %v1992_v40  ;;  %v1995_v46 = vpop.f32.mrb[50].mxu0  ;;  %v998_v47 = vpack.c.bf16 %v960_v39, %v957_v38 }
 0x159   :  { %v1996_v49 = vpop.f32.mrb[51].mxu0 }
 0x15a   :  { %v1997_v50 = vadd.f32 %v1996_v49, %v1995_v46  ;;  %v868_v52 = vadd.f32 %v1994_v43, %v2935_v42  ;;  %v1006_v28 = vmax.bf16 %v2352_v63, %v998_v47 }
 0x15c   :  { %v965_v53 = vadd.f32 %v964_v11, %v868_v52  ;;  %2112 = vmatmul.mubr.bf16.gmra.mrb[52].mxu1 %v1006_v28  ;;  %v871_v54 = vadd.f32 %v1997_v50, %v2937_v45 }
 0x15e   :  { %v968_v51 = vadd.f32 %v967_v19, %v871_v54  ;;  %v1998_v55 = vpop.f32.mrb[52].mxu0 }
 0x15f   :  { %v1999_v30 = vpop.f32.mrb[53].mxu0 }
 0x160   :  { %v999_v56 = vpack.c.bf16 %v968_v51, %v965_v53  ;;  %v2000_v57 = vadd.f32 %v1999_v30, %v1998_v55  ;;  %v2001_v59 = vpop.f32.mrb[54].mxu0 }
 0x161   :  { %v2002_v62 = vpop.f32.mrb[55].mxu0 }
 0x162   :  { %v876_v44 = vadd.f32 %v2000_v57, %v2939_v58  ;;  %v2003_v1 = vadd.f32 %v2002_v62, %v2001_v59  ;;  %v1007_v2 = vmax.bf16 %v2352_v63, %v999_v56 }
 0x164   :  { %v973_v48 = vadd.f32 %v2085_v6, %v876_v44  ;;  %v879_v42 = vadd.f32 %v2003_v1, %v2941_v60  ;;  %2115 = vmatprep.mubr.bf16.mxu1 %v1007_v2 }
 0x166   :  { %v976_v3 = vadd.f32 %v2086_v15, %v879_v42  ;;  %v2004_v4 = vpop.f32.mrb[56].mxu0 }
 0x167   :  { %v2005_v5 = vpop.f32.mrb[57].mxu0 }
 0x168   :  { %v2006_v45 = vadd.f32 %v2005_v5, %v2004_v4  ;;  %v2007_v7 = vpop.f32.mrb[58].mxu0  ;;  %v1000_v8 = vpack.c.bf16 %v976_v3, %v973_v48 }
 0x169   :  { %v2008_v9 = vpop.f32.mrb[59].mxu0 }
 0x16a   :  { %v2009_v11 = vadd.f32 %v2008_v9, %v2007_v7  ;;  %v884_v14 = vadd.f32 %v2006_v45, %v2943_v10  ;;  %v1008_v61 = vmax.bf16 %v2352_v63, %v1000_v8  ;;  %v2262_v7 = vld [vmem:[%s3138_s3 + $0x30] sm:$0xff]   ;;  %v2263_v8 = vld [vmem:[%s3138_s3 + $0x38] sm:$0xff]  }
 0x16c   :  { %v981_v58 = vadd.f32 %v980_v32, %v884_v14  ;;  %2116 = vmatmul.mubr.bf16.gmra.mrb[56].mxu1 %v1008_v61  ;;  %v887_v17 = vadd.f32 %v2009_v11, %v2945_v12  ;;  %v2254_v32 = vld [vmem:[%s3137_s2 + $0x70] sm:$0xff]  }
 0x16d   :  { %2135 = vmatprep.subr.bf16.mxu0 %v2254_v32 }
 0x16e   :  { %v984_v6 = vadd.f32 %v983_v37, %v887_v17  ;;  %v2010_v18 = vpop.f32.mrb[60].mxu0  ;;  %2136 = vmatpush3.bf16.msra.mxu0 %v2254_v32 }
 0x16f   :  { %v2011_v60 = vpop.f32.mrb[61].mxu0 }
 0x170   :  { %v1001_v19 = vpack.c.bf16 %v984_v6, %v981_v58  ;;  %v2012_v15 = vadd.f32 %v2011_v60, %v2010_v18  ;;  %v2013_v20 = vpop.f32.mrb[62].mxu0 }
 0x171   :  { %v2014_v0 = vpop.f32.mrb[63].mxu0 }
 0x172   :  { %v892_v21 = vadd.f32 %v2012_v15, %v2947_v26  ;;  %v2015_v22 = vadd.f32 %v2014_v0, %v2013_v20  ;;  %v1009_v23 = vmax.bf16 %v2352_v63, %v1001_v19  ;;  %v2255_v26 = vld [vmem:[%s3137_s2 + $0x78] sm:$0xff]  }
 0x173   :  { %2137 = vmatprep.subr.bf16.mxu0 %v2255_v26 }
 0x174   :  { %v989_v10 = vadd.f32 %v2959_v24, %v892_v21  ;;  %v895_v25 = vadd.f32 %v2015_v22, %v2949_v29  ;;  %2119 = vmatprep.mubr.bf16.mxu1 %v1009_v23  ;;  %2138 = vmatpush3.bf16.msra.mxu0 %v2255_v26  ;;  %v2256_v29 = vld [vmem:[%s3138_s3] sm:$0xff]   ;;  %v2257_v24 = vld [vmem:[%s3138_s3 + $0x8] sm:$0xff]  }
 0x175   :  { %2155 = vmatprep.subr.bf16.mxu1 %v2256_v29 }
 0x176   :  { %v992_v27 = vadd.f32 %v2090_v34, %v895_v25  ;;  %2156 = vmatpush3.bf16.msra.mxu1 %v2256_v29  ;;  %v2259_v34 = vld [vmem:[%s3138_s3 + $0x18] sm:$0xff]  }
 0x177   :  { %2157 = vmatprep.subr.bf16.mxu1 %v2257_v24 }
 0x178   :  { %v1002_v31 = vpack.c.bf16 %v992_v27, %v989_v10 }
 0x17a   :  { %v1010_v12 = vmax.bf16 %v2352_v63, %v1002_v31  ;;  %2158 = vmatpush3.bf16.msra.mxu1 %v2257_v24 }
 0x17b   :  { %2159 = vmatprep.subr.bf16.mxu1 %v2258_v33 }
 0x17c   :  { %2120 = vmatmul.mubr.bf16.gmra.mrb[60].mxu1 %v1010_v12 }
 0x17e   :  { %2160 = vmatpush3.bf16.msra.mxu1 %v2258_v33 }
 0x17f   :  { %2161 = vmatprep.subr.bf16.mxu1 %v2259_v34 }
 0x182   :  { %2162 = vmatpush3.bf16.msra.mxu1 %v2259_v34 }
 0x183   :  { %2163 = vmatprep.subr.bf16.mxu1 %v2260_v35 }
 0x186   :  { %2164 = vmatpush3.bf16.msra.mxu1 %v2260_v35 }
 0x187   :  { %2165 = vmatprep.subr.bf16.mxu1 %v2261_v36 }
 0x18a   :  { %2166 = vmatpush3.bf16.msra.mxu1 %v2261_v36 }
 0x18b   :  { %2167 = vmatprep.subr.bf16.mxu1 %v2262_v7 }
 0x18e   :  { %2168 = vmatpush3.bf16.msra.mxu1 %v2262_v7 }
 0x18f   :  { %2169 = vmatprep.subr.bf16.mxu1 %v2263_v8 }
 0x192   :  { %2170 = vmatpush3.bf16.msra.mxu1 %v2263_v8 }
 0x21f   :  { %v2109_v13 = vpop.f32.mrb[48].mxu1 }
 0x220   :  { %v1109_v37 = vpop.f32.mrb[49].mxu1 }
 0x221   :  { %v2110_v38 = vpop.f32.mrb[50].mxu1 }
 0x222   :  { %v1173_v16 = vpack.c.bf16 %v2110_v38, %v2109_v13  ;;  %v1112_v39 = vpop.f32.mrb[51].mxu1 }
 0x223   :  { %v1172_v40 = vpack.c.bf16 %v1112_v39, %v1109_v37 }
 0x224   :  { %v1181_v43 = vmax.bf16 %v2352_v63, %v1173_v16  ;;  %v1815_v16 = vld [vmem:[%s3139_s4] ss:$0 sm:$0xff]  ;;  %s2353_s4 = smov [#allocation2]  }
 0x225   :  { %v1180_v41 = vmax.bf16 %v2352_v63, %v1172_v40  ;;  %s1715_s29 = sshll.u32 %s2353_s4, 4  ;;  %s1716_s29 = int_to_ptr.vmem [resolvable:$true] %s1715_s29 }
 0x226   :  { %s2328_s30 = scalar_lea.vmem %s1716_s29, 2048  ;;  %p2333_p1 = scmp.lt.s32.totalorder %s1716_s29, %s1716_s29 }
 0x227   :  { %2139 = vmatprep.mubr.bf16.mxu0 %v1180_v41  ;;  %p2329_p0 = scmp.ne.s32.totalorder %s1716_s29, %s2328_s30  ;;  %p2334_p2 = scmp.lt.s32.totalorder %s2328_s30, %s2328_s30 }
 0x228   :  { %2140 = vmatmul.mubr.bf16.vlgmr.msra.gmra.mrb[64].mxu0 %v1181_v43 }
 0x229   :  { %p2335_p3 = por %p2334_p2, %p2333_p1 }
 0x22b   :  { %p2336_p4 = pnand %p2335_p3, %p2329_p0 }
 0x22f   :  { %v2113_v46 = vpop.f32.mrb[52].mxu1 }
 0x230   :  { %v1125_v47 = vpop.f32.mrb[53].mxu1 }
 0x231   :  { %v2114_v49 = vpop.f32.mrb[54].mxu1 }
 0x232   :  { %v1175_v50 = vpack.c.bf16 %v2114_v49, %v2113_v46  ;;  %v1128_v52 = vpop.f32.mrb[55].mxu1 }
 0x233   :  { %v1174_v28 = vpack.c.bf16 %v1128_v52, %v1125_v47 }
 0x234   :  { %v1183_v54 = vmax.bf16 %v2352_v63, %v1175_v50 }
 0x235   :  { %v1182_v53 = vmax.bf16 %v2352_v63, %v1174_v28 }
 0x237   :  { %2143 = vmatprep.mubr.bf16.mxu0 %v1182_v53 }
 0x238   :  { %2144 = vmatmul.mubr.bf16.gmra.mrb[68].mxu0 %v1183_v54 }
 0x23f   :  { %v2117_v51 = vpop.f32.mrb[56].mxu1 }
 0x240   :  { %v1141_v55 = vpop.f32.mrb[57].mxu1 }
 0x241   :  { %v2118_v30 = vpop.f32.mrb[58].mxu1 }
 0x242   :  { %v1177_v56 = vpack.c.bf16 %v2118_v30, %v2117_v51  ;;  %v1144_v57 = vpop.f32.mrb[59].mxu1 }
 0x243   :  { %v1176_v59 = vpack.c.bf16 %v1144_v57, %v1141_v55 }
 0x244   :  { %v1185_v44 = vmax.bf16 %v2352_v63, %v1177_v56 }
 0x245   :  { %v1184_v62 = vmax.bf16 %v2352_v63, %v1176_v59 }
 0x247   :  { %2147 = vmatprep.mubr.bf16.mxu0 %v1184_v62 }
 0x248   :  { %2148 = vmatmul.mubr.bf16.gmra.mrb[72].mxu0 %v1185_v44 }
 0x24f   :  { %v2121_v1 = vpop.f32.mrb[60].mxu1 }
 0x250   :  { %v1157_v2 = vpop.f32.mrb[61].mxu1 }
 0x251   :  { %v2122_v48 = vpop.f32.mrb[62].mxu1 }
 0x252   :  { %v1179_v42 = vpack.c.bf16 %v2122_v48, %v2121_v1  ;;  %v1160_v3 = vpop.f32.mrb[63].mxu1 }
 0x253   :  { %v1178_v4 = vpack.c.bf16 %v1160_v3, %v1157_v2 }
 0x254   :  { %v1187_v45 = vmax.bf16 %v2352_v63, %v1179_v42 }
 0x255   :  { %v1186_v5 = vmax.bf16 %v2352_v63, %v1178_v4 }
 0x257   :  { %2151 = vmatprep.mubr.bf16.mxu0 %v1186_v5 }
 0x258   :  { %2152 = vmatmul.mubr.bf16.gmra.mrb[76].mxu0 %v1187_v45 }
 0x2fb   :  { %v2141_v9 = vpop.f32.mrb[64].mxu0 }
 0x2fc   :  { %v1287_v11 = vpop.f32.mrb[65].mxu0 }
 0x2fd   :  { %v2142_v14 = vpop.f32.mrb[66].mxu0 }
 0x2fe   :  { %v1351_v61 = vpack.c.bf16 %v2142_v14, %v2141_v9  ;;  %v1290_v58 = vpop.f32.mrb[67].mxu0 }
 0x2ff   :  { %v1350_v17 = vpack.c.bf16 %v1290_v58, %v1287_v11 }
 0x300   :  { %v1359_v18 = vmax.bf16 %v2352_v63, %v1351_v61 }
 0x301   :  { %v1358_v6 = vmax.bf16 %v2352_v63, %v1350_v17 }
 0x303   :  { %2171 = vmatprep.mubr.bf16.mxu1 %v1358_v6 }
 0x304   :  { %2172 = vmatmul.mubr.bf16.vlgmr.msra.gmra.mrb[64].mxu1 %v1359_v18 }
 0x30b   :  { %v2145_v60 = vpop.f32.mrb[68].mxu0 }
 0x30c   :  { %v1303_v19 = vpop.f32.mrb[69].mxu0 }
 0x30d   :  { %v2146_v15 = vpop.f32.mrb[70].mxu0 }
 0x30e   :  { %v1353_v20 = vpack.c.bf16 %v2146_v15, %v2145_v60  ;;  %v1306_v0 = vpop.f32.mrb[71].mxu0 }
 0x30f   :  { %v1352_v21 = vpack.c.bf16 %v1306_v0, %v1303_v19 }
 0x310   :  { %v1361_v23 = vmax.bf16 %v2352_v63, %v1353_v20 }
 0x311   :  { %v1360_v22 = vmax.bf16 %v2352_v63, %v1352_v21 }
 0x313   :  { %2175 = vmatprep.mubr.bf16.mxu1 %v1360_v22 }
 0x314   :  { %2176 = vmatmul.mubr.bf16.gmra.mrb[68].mxu1 %v1361_v23 }
 0x31b   :  { %v2149_v10 = vpop.f32.mrb[72].mxu0 }
 0x31c   :  { %v1319_v25 = vpop.f32.mrb[73].mxu0 }
 0x31d   :  { %v2150_v27 = vpop.f32.mrb[74].mxu0 }
 0x31e   :  { %v1355_v31 = vpack.c.bf16 %v2150_v27, %v2149_v10  ;;  %v1322_v12 = vpop.f32.mrb[75].mxu0 }
 0x31f   :  { %v1354_v32 = vpack.c.bf16 %v1322_v12, %v1319_v25 }
 0x320   :  { %v1363_v29 = vmax.bf16 %v2352_v63, %v1355_v31 }
 0x321   :  { %v1362_v26 = vmax.bf16 %v2352_v63, %v1354_v32 }
 0x323   :  { %2179 = vmatprep.mubr.bf16.mxu1 %v1362_v26 }
 0x324   :  { %2180 = vmatmul.mubr.bf16.gmra.mrb[72].mxu1 %v1363_v29 }
 0x32b   :  { %v2153_v24 = vpop.f32.mrb[76].mxu0 }
 0x32c   :  { %v1335_v33 = vpop.f32.mrb[77].mxu0 }
 0x32d   :  { %v2154_v34 = vpop.f32.mrb[78].mxu0 }
 0x32e   :  { %v1357_v35 = vpack.c.bf16 %v2154_v34, %v2153_v24  ;;  %v1338_v36 = vpop.f32.mrb[79].mxu0 }
 0x32f   :  { %v1356_v13 = vpack.c.bf16 %v1338_v36, %v1335_v33 }
 0x330   :  { %v1365_v38 = vmax.bf16 %v2352_v63, %v1357_v35 }
 0x331   :  { %v1364_v37 = vmax.bf16 %v2352_v63, %v1356_v13 }
 0x333   :  { %2183 = vmatprep.mubr.bf16.mxu1 %v1364_v37 }
 0x334   :  { %2184 = vmatmul.mubr.bf16.gmra.mrb[76].mxu1 %v1365_v38 }
 0x3d7   :  { %v2173_v39 = vpop.f32.mrb[64].mxu1 }
 0x3d8   :  { %v1480_v40 = vadd.f32 %v2173_v39, %v1815_v16  ;;  %v1471_v41 = vpop.f32.mrb[65].mxu1 }
 0x3d9   :  { %v1472_v43 = vadd.f32 %v1815_v16, %v1471_v41  ;;  %v2174_v46 = vpop.f32.mrb[66].mxu1 }
 0x3da   :  { %1538 = vmax.xlane.f32.xlu1 %v1480_v40  ;;  %v1474_v47 = vpop.f32.mrb[67].mxu1  ;;  %v1483_v49 = vadd.f32 %v2174_v46, %v1815_v16 }
 0x3db   :  { %1534 = vmax.xlane.f32.xlu0 %v1472_v43  ;;  %v1475_v50 = vadd.f32 %v1815_v16, %v1474_v47 }
 0x3de   :  { %1540 = vmax.xlane.f32.xlu1 %v1483_v49 }
 0x3df   :  { %1536 = vmax.xlane.f32.xlu0 %v1475_v50 }
 0x3e7   :  { %v2177_v52 = vpop.f32.mrb[68].mxu1 }
 0x3e8   :  { %v1496_v63 = vadd.f32 %v2177_v52, %v1815_v16  ;;  %v1487_v28 = vpop.f32.mrb[69].mxu1 }
 0x3e9   :  { %v2178_v53 = vpop.f32.mrb[70].mxu1  ;;  %v1488_v55 = vadd.f32 %v1815_v16, %v1487_v28 }
 0x3ea   :  { %v1499_v54 = vadd.f32 %v2178_v53, %v1815_v16  ;;  %v1490_v51 = vpop.f32.mrb[71].mxu1  ;;  %1546 = vmax.xlane.f32.xlu0 %v1496_v63 }
 0x3eb   :  { %v1491_v30 = vadd.f32 %v1815_v16, %v1490_v51 }
 0x3ec   :  { %1548 = vmax.xlane.f32.xlu1 %v1499_v54 }
 0x3ee   :  { %1542 = vmax.xlane.f32.xlu0 %v1488_v55 }
 0x3f0   :  { %1544 = vmax.xlane.f32.xlu1 %v1491_v30 }
 0x3f7   :  { %v2181_v56 = vpop.f32.mrb[72].mxu1 }
 0x3f8   :  { %v3027_v57 = vadd.f32 %v2181_v56, %v1815_v16  ;;  %v1503_v59 = vpop.f32.mrb[73].mxu1 }
 0x3f9   :  { %v2182_v62 = vpop.f32.mrb[74].mxu1  ;;  %v3032_v2 = vadd.f32 %v1815_v16, %v1503_v59 }
 0x3fa   :  { %v3029_v44 = vadd.f32 %v2182_v62, %v1815_v16  ;;  %v1506_v1 = vpop.f32.mrb[75].mxu1  ;;  %1554 = vmax.xlane.f32.xlu0 %v3027_v57 }
 0x3fb   :  { %v3035_v48 = vadd.f32 %v1815_v16, %v1506_v1 }
 0x3fc   :  { %1556 = vmax.xlane.f32.xlu1 %v3029_v44 }
 0x3fe   :  { %1550 = vmax.xlane.f32.xlu0 %v3032_v2 }
 0x400   :  { %1552 = vmax.xlane.f32.xlu1 %v3035_v48 }
 0x407   :  { %v2185_v42 = vpop.f32.mrb[76].mxu1 }
 0x408   :  { %v1519_v3 = vpop.f32.mrb[77].mxu1  ;;  %v3044_v8 = vadd.f32 %v2185_v42, %v1815_v16 }
 0x409   :  { %v3039_v4 = vadd.f32 %v1815_v16, %v1519_v3  ;;  %v2186_v5 = vpop.f32.mrb[78].mxu1 }
 0x40a   :  { %v1522_v45 = vpop.f32.mrb[79].mxu1  ;;  %v3047_v9 = vadd.f32 %v2186_v5, %v1815_v16 }
 0x40b   :  { %v3041_v7 = vadd.f32 %v1815_v16, %v1522_v45  ;;  %1558 = vmax.xlane.f32.xlu0 %v3039_v4 }
 0x40d   :  { %1560 = vmax.xlane.f32.xlu1 %v3041_v7 }
 0x40f   :  { %1562 = vmax.xlane.f32.xlu0 %v3044_v8 }
 0x411   :  { %1564 = vmax.xlane.f32.xlu1 %v3047_v9 }
 0x467   :  { %v1539_v11 = vpop.xlane.xlu1 %1538 }
 0x468   :  { %v3051_v14 = vsub.f32 %v1480_v40, %v1539_v11  ;;  %v1535_v61 = vpop.xlane.xlu0 %1534 }
 0x469   :  { %v3053_v58 = vsub.f32 %v1472_v43, %v1535_v61 }
 0x46a   :  { %v1586_v17 = vmul.f32 1.442695, %v3051_v14 }
 0x46b   :  { %v1582_v6 = vmul.f32 1.442695, %v3053_v58  ;;  %v1541_v18 = vpop.xlane.xlu1 %1540 }
 0x46c   :  { %2264 = vpow2.f32 %v1586_v17  ;;  %v3057_v60 = vsub.f32 %v1483_v49, %v1541_v18  ;;  %v1537_v19 = vpop.xlane.xlu0 %1536 }
 0x46d   :  { %v3059_v15 = vsub.f32 %v1475_v50, %v1537_v19  ;;  %2266 = vpow2.f32 %v1582_v6 }
 0x46e   :  { %v1588_v20 = vmul.f32 1.442695, %v3057_v60 }
 0x46f   :  { %v1584_v0 = vmul.f32 1.442695, %v3059_v15 }
 0x470   :  { %2268 = vpow2.f32 %v1588_v20 }
 0x471   :  { %2270 = vpow2.f32 %v1584_v0 }
 0x476   :  { %v2265_v21 = vpop.eup %2264 }
 0x477   :  { %v1547_v22 = vpop.xlane.xlu0 %1546  ;;  %1618 = vadd.xlane.f32.xlu0 %v2265_v21  ;;  %v2267_v10 = vpop.eup %2266 }
 0x478   :  { %v3063_v23 = vsub.f32 %v1496_v63, %v1547_v22 }
 0x479   :  { %v1549_v25 = vpop.xlane.xlu1 %1548 }
 0x47a   :  { %v2269_v27 = vpop.eup %2268  ;;  %v1594_v31 = vmul.f32 1.442695, %v3063_v23  ;;  %v3066_v12 = vsub.f32 %v1499_v54, %v1549_v25 }
 0x47b   :  { %v1543_v32 = vpop.xlane.xlu0 %1542  ;;  %1620 = vadd.xlane.f32.xlu1 %v2269_v27  ;;  %1614 = vadd.xlane.f32.xlu0 %v2267_v10  ;;  %v2271_v33 = vpop.eup %2270 }
 0x47c   :  { %2272 = vpow2.f32 %v1594_v31  ;;  %v1596_v26 = vmul.f32 1.442695, %v3066_v12  ;;  %v3069_v29 = vsub.f32 %v1488_v55, %v1543_v32 }
 0x47d   :  { %v1545_v24 = vpop.xlane.xlu1 %1544 }
 0x47e   :  { %2274 = vpow2.f32 %v1596_v26  ;;  %v1590_v34 = vmul.f32 1.442695, %v3069_v29  ;;  %v3072_v35 = vsub.f32 %v1491_v30, %v1545_v24 }
 0x47f   :  { %1616 = vadd.xlane.f32.xlu1 %v2271_v33 }
 0x480   :  { %2276 = vpow2.f32 %v1590_v34  ;;  %v1592_v36 = vmul.f32 1.442695, %v3072_v35 }
 0x482   :  { %2278 = vpow2.f32 %v1592_v36 }
 0x486   :  { %v2273_v13 = vpop.eup %2272 }
 0x487   :  { %v1555_v37 = vpop.xlane.xlu0 %1554  ;;  %1626 = vadd.xlane.f32.xlu0 %v2273_v13 }
 0x488   :  { %v2275_v38 = vpop.eup %2274  ;;  %v3076_v16 = vsub.f32 %v3027_v57, %v1555_v37 }
 0x489   :  { %v1557_v39 = vpop.xlane.xlu1 %1556  ;;  %1628 = vadd.xlane.f32.xlu1 %v2275_v38 }
 0x48a   :  { %v2277_v40 = vpop.eup %2276  ;;  %v1602_v41 = vmul.f32 1.442695, %v3076_v16  ;;  %v3080_v43 = vsub.f32 %v3029_v44, %v1557_v39 }
 0x48b   :  { %v1551_v46 = vpop.xlane.xlu0 %1550  ;;  %1622 = vadd.xlane.f32.xlu0 %v2277_v40 }
 0x48c   :  { %v2279_v47 = vpop.eup %2278  ;;  %2280 = vpow2.f32 %v1602_v41  ;;  %v1604_v49 = vmul.f32 1.442695, %v3080_v43  ;;  %v3084_v50 = vsub.f32 %v3032_v2, %v1551_v46 }
 0x48d   :  { %v1553_v52 = vpop.xlane.xlu1 %1552  ;;  %1624 = vadd.xlane.f32.xlu1 %v2279_v47 }
 0x48e   :  { %2282 = vpow2.f32 %v1604_v49  ;;  %v1598_v63 = vmul.f32 1.442695, %v3084_v50  ;;  %v3088_v28 = vsub.f32 %v3035_v48, %v1553_v52 }
 0x490   :  { %2284 = vpow2.f32 %v1598_v63  ;;  %v1600_v53 = vmul.f32 1.442695, %v3088_v28 }
 0x492   :  { %2286 = vpow2.f32 %v1600_v53 }
 0x496   :  { %v2281_v54 = vpop.eup %2280 }
 0x497   :  { %1634 = vadd.xlane.f32.xlu0 %v2281_v54 }
 0x498   :  { %v2283_v51 = vpop.eup %2282  ;;  %v1559_v55 = vpop.xlane.xlu0 %1558 }
 0x499   :  { %v3092_v30 = vsub.f32 %v3039_v4, %v1559_v55  ;;  %1636 = vadd.xlane.f32.xlu1 %v2283_v51 }
 0x49a   :  { %v2285_v56 = vpop.eup %2284  ;;  %v1561_v57 = vpop.xlane.xlu1 %1560 }
 0x49b   :  { %v1606_v59 = vmul.f32 1.442695, %v3092_v30  ;;  %v3096_v62 = vsub.f32 %v3041_v7, %v1561_v57  ;;  %1630 = vadd.xlane.f32.xlu0 %v2285_v56 }
 0x49c   :  { %v2287_v44 = vpop.eup %2286  ;;  %v1563_v1 = vpop.xlane.xlu0 %1562 }
 0x49d   :  { %2288 = vpow2.f32 %v1606_v59  ;;  %v1608_v2 = vmul.f32 1.442695, %v3096_v62  ;;  %v3100_v48 = vsub.f32 %v3044_v8, %v1563_v1  ;;  %1632 = vadd.xlane.f32.xlu1 %v2287_v44 }
 0x49e   :  { %v1565_v42 = vpop.xlane.xlu1 %1564 }
 0x49f   :  { %2290 = vpow2.f32 %v1608_v2  ;;  %v1610_v3 = vmul.f32 1.442695, %v3100_v48  ;;  %v3104_v4 = vsub.f32 %v3047_v9, %v1565_v42 }
 0x4a1   :  { %2292 = vpow2.f32 %v1610_v3  ;;  %v1612_v5 = vmul.f32 1.442695, %v3104_v4 }
 0x4a3   :  { %2294 = vpow2.f32 %v1612_v5 }
 0x4a7   :  { %v2289_v45 = vpop.eup %2288 }
 0x4a8   :  { %1638 = vadd.xlane.f32.xlu0 %v2289_v45 }
 0x4a9   :  { %v2291_v7 = vpop.eup %2290 }
 0x4aa   :  { %1640 = vadd.xlane.f32.xlu1 %v2291_v7 }
 0x4ab   :  { %v2293_v11 = vpop.eup %2292 }
 0x4ac   :  { %1642 = vadd.xlane.f32.xlu0 %v2293_v11 }
 0x4ad   :  { %v2295_v8 = vpop.eup %2294 }
 0x4ae   :  { %1644 = vadd.xlane.f32.xlu1 %v2295_v8 }
 0x504   :  { %v1619_v61 = vpop.xlane.xlu0 %1618 }
 0x505   :  { %2296 = vlog2.f32 %v1619_v61 }
 0x508   :  { %v1621_v17 = vpop.xlane.xlu1 %1620  ;;  %v1615_v6 = vpop.xlane.xlu0 %1614 }
 0x509   :  { %2298 = vlog2.f32 %v1621_v17 }
 0x50a   :  { %2300 = vlog2.f32 %v1615_v6 }
 0x50c   :  { %v1617_v9 = vpop.xlane.xlu1 %1616 }
 0x50d   :  { %2302 = vlog2.f32 %v1617_v9 }
 0x50f   :  { %v2297_v18 = vpop.eup %2296 }
 0x510   :  { %v1651_v19 = vmul.f32 0.6931472, %v2297_v18 }
 0x512   :  { %v1680_v20 = vsub.f32 %v3051_v14, %v1651_v19 }
 0x513   :  { %v2299_v0 = vpop.eup %2298 }
 0x514   :  { %v2301_v21 = vpop.eup %2300  ;;  %1696 = vst [vmem:[#allocation2 + $0x10] sm:$0xff] %v1680_v20  ;;  %v1653_v22 = vmul.f32 0.6931472, %v2299_v0  ;;  %v1627_v10 = vpop.xlane.xlu0 %1626 }
 0x515   :  { %v1647_v25 = vmul.f32 0.6931472, %v2301_v21  ;;  %2304 = vlog2.f32 %v1627_v10 }
 0x516   :  { %v1681_v27 = vsub.f32 %v3057_v60, %v1653_v22  ;;  %v1629_v31 = vpop.xlane.xlu1 %1628 }
 0x517   :  { %v2303_v32 = vpop.eup %2302  ;;  %v1678_v26 = vsub.f32 %v3053_v58, %v1647_v25  ;;  %2306 = vlog2.f32 %v1629_v31 }
 0x518   :  { %1697 = vst [vmem:[#allocation2 + $0x18] sm:$0xff] %v1681_v27  ;;  %v1649_v24 = vmul.f32 0.6931472, %v2303_v32  ;;  %v1623_v33 = vpop.xlane.xlu0 %1622 }
 0x519   :  { %1694 = vst [vmem:[#allocation2] sm:$0xff] %v1678_v26  ;;  %2308 = vlog2.f32 %v1623_v33 }
 0x51a   :  { %v1679_v14 = vsub.f32 %v3059_v15, %v1649_v24  ;;  %v1625_v34 = vpop.xlane.xlu1 %1624 }
 0x51b   :  { %2310 = vlog2.f32 %v1625_v34 }
 0x51c   :  { %1695 = vst [vmem:[#allocation2 + $0x8] sm:$0xff] %v1679_v14 }
 0x51f   :  { %v2305_v36 = vpop.eup %2304 }
 0x520   :  { %v1659_v13 = vmul.f32 0.6931472, %v2305_v36 }
 0x521   :  { %v2307_v37 = vpop.eup %2306 }
 0x522   :  { %v1684_v60 = vsub.f32 %v3063_v23, %v1659_v13  ;;  %v1661_v38 = vmul.f32 0.6931472, %v2307_v37 }
 0x523   :  { %v2309_v39 = vpop.eup %2308 }
 0x524   :  { %1700 = vst [vmem:[#allocation2 + $0x30] sm:$0xff] %v1684_v60  ;;  %v1685_v58 = vsub.f32 %v3066_v12, %v1661_v38  ;;  %v1655_v40 = vmul.f32 0.6931472, %v2309_v39  ;;  %v1635_v41 = vpop.xlane.xlu0 %1634 }
 0x525   :  { %v2311_v46 = vpop.eup %2310  ;;  %2312 = vlog2.f32 %v1635_v41 }
 0x526   :  { %1701 = vst [vmem:[#allocation2 + $0x38] sm:$0xff] %v1685_v58  ;;  %v1682_v15 = vsub.f32 %v3069_v29, %v1655_v40  ;;  %v1657_v47 = vmul.f32 0.6931472, %v2311_v46  ;;  %v1637_v49 = vpop.xlane.xlu1 %1636 }
 0x527   :  { %2314 = vlog2.f32 %v1637_v49 }
 0x528   :  { %1698 = vst [vmem:[#allocation2 + $0x20] sm:$0xff] %v1682_v15  ;;  %v1683_v52 = vsub.f32 %v3072_v35, %v1657_v47  ;;  %v1631_v63 = vpop.xlane.xlu0 %1630 }
 0x529   :  { %2316 = vlog2.f32 %v1631_v63 }
 0x52a   :  { %1699 = vst [vmem:[#allocation2 + $0x28] sm:$0xff] %v1683_v52  ;;  %v1633_v23 = vpop.xlane.xlu1 %1632 }
 0x52b   :  { %2318 = vlog2.f32 %v1633_v23 }
 0x52f   :  { %v2313_v53 = vpop.eup %2312 }
 0x530   :  { %v1667_v12 = vmul.f32 0.6931472, %v2313_v53 }
 0x531   :  { %v2315_v54 = vpop.eup %2314 }
 0x532   :  { %v1688_v51 = vsub.f32 %v3076_v16, %v1667_v12  ;;  %v1669_v55 = vmul.f32 0.6931472, %v2315_v54 }
 0x533   :  { %v2317_v56 = vpop.eup %2316 }
 0x534   :  { %1704 = vst [vmem:[#allocation2 + $0x50] sm:$0xff] %v1688_v51  ;;  %v1689_v29 = vsub.f32 %v3080_v43, %v1669_v55  ;;  %v1663_v57 = vmul.f32 0.6931472, %v2317_v56 }
 0x535   :  { %v2319_v59 = vpop.eup %2318  ;;  %v1639_v44 = vpop.xlane.xlu0 %1638 }
 0x536   :  { %1705 = vst [vmem:[#allocation2 + $0x58] sm:$0xff] %v1689_v29  ;;  %v1686_v35 = vsub.f32 %v3084_v50, %v1663_v57  ;;  %v1665_v1 = vmul.f32 0.6931472, %v2319_v59  ;;  %2320 = vlog2.f32 %v1639_v44 }
 0x537   :  { %v1641_v2 = vpop.xlane.xlu1 %1640 }
 0x538   :  { %1702 = vst [vmem:[#allocation2 + $0x40] sm:$0xff] %v1686_v35  ;;  %v1687_v42 = vsub.f32 %v3088_v28, %v1665_v1  ;;  %2322 = vlog2.f32 %v1641_v2 }
 0x539   :  { %v1643_v3 = vpop.xlane.xlu0 %1642 }
 0x53a   :  { %1703 = vst [vmem:[#allocation2 + $0x48] sm:$0xff] %v1687_v42  ;;  %2324 = vlog2.f32 %v1643_v3 }
 0x53b   :  { %v1645_v16 = vpop.xlane.xlu1 %1644 }
 0x53c   :  { %2326 = vlog2.f32 %v1645_v16 }
 0x540   :  { %v2321_v5 = vpop.eup %2320 }
 0x541   :  { %v1671_v43 = vmul.f32 0.6931472, %v2321_v5 }
 0x542   :  { %v2323_v45 = vpop.eup %2322 }
 0x543   :  { %v1690_v7 = vsub.f32 %v3092_v30, %v1671_v43  ;;  %v1673_v11 = vmul.f32 0.6931472, %v2323_v45 }
 0x544   :  { %v2325_v8 = vpop.eup %2324 }
 0x545   :  { %1706 = vst [vmem:[#allocation2 + $0x60] sm:$0xff] %v1690_v7  ;;  %v1691_v50 = vsub.f32 %v3096_v62, %v1673_v11  ;;  %v1675_v61 = vmul.f32 0.6931472, %v2325_v8 }
 0x546   :  { %v2327_v17 = vpop.eup %2326 }
 0x547   :  { %1707 = vst [vmem:[#allocation2 + $0x68] sm:$0xff] %v1691_v50  ;;  %v1692_v28 = vsub.f32 %v3100_v48, %v1675_v61  ;;  %v1677_v6 = vmul.f32 0.6931472, %v2327_v17 }
 0x549   :  { %1708 = vst [vmem:[#allocation2 + $0x70] sm:$0xff] %v1692_v28  ;;  %v1693_v9 = vsub.f32 %v3104_v4, %v1677_v6 }
 0x54b   :  { %1709 = vst [vmem:[#allocation2 + $0x78] sm:$0xff] %v1693_v9 }
 0x54c   :  { %2339 = shalt.err (!%p2336_p4)
}
 0x54d   :  { %s2340_s8 = scalar_lea.hbm %s3140_s5, 2048 }
 0x54e   :  { %p2341_p5 = scmp.ne.s32.totalorder %s3140_s5, %s2340_s8  ;;  %p2344_p6 = scmp.lt.u32.totalorder %s2340_s8, %s3140_s5 }
 0x550   :  { %p2346_p7 = pnand %p2344_p6, %p2341_p5 }
 0x552   :  { %2349 = shalt.err (!%p2346_p7)
}
 0x553   :  { %s2354_s13 = smov 128   ;;  %s2355_s14 = smov 8  }
 0x554   :  { %1721 = dma.vmem_to_hbm [thread:$0]  %s1716_s29, 2048, %s3140_s5, [#allocation3], %s2354_s13, %s2354_s13, %s2355_s14  }
 0x555   :  { %2350 = dma.done.wait [#allocation3], 2048  }
 0x556   :  { %2351 = vsyncadd [#allocation3], 4294965248 }
 0x557   :  { %1725 = vsyncpa [#allocation3], 1 }

</bundles_post_ra>
